<compile_context>
chip_gen: v7x
topology: tpu7x:2x2x1
jax: 0.10.0
libtpu: 0.0.40
codegen_flags: <defaults>
</compile_context>

<pallas_src>
import functools

import jax
import jax.numpy as jnp
from jax import lax
from jax.experimental import pallas as pl
from jax.experimental.pallas import tpu as pltpu


def _round_up(a, b):
    return (a + b - 1) // b * b


def kmeans_kernel(x_ref, c_init_ref, out_ref, c_ref, xbf_ref, *, num_iter,
                  num_clusters, num_points):
    """x_ref:      (Np, Fa) f32  — features zero-padded, padded point rows all-zero.
       c_init_ref: (Kp, Fa) f32  — padded centroid rows all-zero.
       out_ref:    (1, Np) int32 — lane-dense assignments.
       c_ref:      (Kp, Fa) f32 VMEM scratch — the "nn.Parameter" centroids.
       xbf_ref:    (Np, Fa) bf16 VMEM scratch — loop-invariant bf16 copy of x."""
    Np, Fa = x_ref.shape
    Kp, _ = c_init_ref.shape

    # "parameter" centroids live in VMEM scratch (emulates nn.Parameter.data update)
    c_ref[...] = c_init_ref[...]
    # stage the loop-invariant bf16 copy of x once (distance matmul operand)
    xbf_ref[...] = x_ref[...].astype(jnp.bfloat16)

    # ---- loop-invariant values (hoisted: JAX does not CSE broadcast_in_dim) ----
    row_ids = lax.broadcasted_iota(jnp.int32, (Kp, Np), 0)          # centroid id/row
    k_col = lax.broadcasted_iota(jnp.int32, (Kp, 1), 0)
    # padded centroid rows can never win the argmin
    penalty = jnp.where(k_col < num_clusters, 0.0, 1e30).astype(jnp.float32)
    # padded point columns must not contribute to cluster counts
    valid_pt = lax.broadcasted_iota(jnp.int32, (Kp, Np), 1) < num_points

    def body(_, last_assign):
        xv = x_ref[...]                                    # (Np, Fa) f32  (sums)
        xb = xbf_ref[...]                                  # (Np, Fa) bf16 (dists)
        c = c_ref[...]                                     # (Kp, Fa) f32

        # ---- distance proxy on the MXU (bf16 in, f32 acc): ||c||^2 - 2*c@x.T ----
        dots = lax.dot_general(c.astype(jnp.bfloat16), xb,
                               (((1,), (1,)), ((), ())),
                               preferred_element_type=jnp.float32)   # (Kp, Np)
        c_norm = jnp.sum(c * c, axis=1, keepdims=True)               # (Kp, 1)
        dist = c_norm - 2.0 * dots + penalty                         # (Kp, Np)

        # ---- argmin over centroids (sublane axis), first-occurrence tie-break ----
        min_val = jnp.min(dist, axis=0, keepdims=True)               # (1, Np)
        assign = jnp.min(jnp.where(dist <= min_val, row_ids, Kp),
                         axis=0, keepdims=True)                      # (1, Np) int32

        # ---- centroid update ----
        # one-hot memberships; padded point columns masked (their x rows are all
        # zero, so the sums matmul is already safe — the mask protects counts).
        one_hot = ((assign == row_ids) & valid_pt).astype(jnp.float32)  # (Kp, Np)

        # sums on the MXU (f32 for mean precision); counts as a lane reduce of the
        # single (Kp, Np) one-hot vreg (XLU); reciprocal on the EUP.
        sums = lax.dot_general(one_hot, xv, (((1,), (0,)), ((), ())),
                               preferred_element_type=jnp.float32)   # (Kp, Fa)
        counts = jnp.sum(one_hot, axis=1, keepdims=True)             # (Kp, 1)
        inv = pl.reciprocal(jnp.maximum(counts, 1.0), approx=True)   # (Kp, 1)
        # empty clusters keep their previous centroid (matches the PyTorch module)
        c_ref[...] = jnp.where(counts > 0.0, sums * inv, c)
        return assign

    final_assign = lax.fori_loop(0, num_iter, body,
                                 jnp.zeros((1, Np), jnp.int32), unroll=True)
    # single lane-dense store; only the final iteration's assignments are observable
    out_ref[...] = final_assign


def kmeans_assign(x, centroids, num_iter=10):
    N, F = x.shape
    K, _ = centroids.shape

    Fa = _round_up(F, 128)          # lane-padded feature width (no ones column)
    Np = _round_up(N, 128)          # lane-padded point count (points on lanes)
    Kp = max(8, _round_up(K, 8))    # sublane-padded cluster count (keep minimal)

    x_pad = jnp.zeros((Np, Fa), jnp.float32)
    x_pad = x_pad.at[:N, :F].set(x.astype(jnp.float32))

    c_pad = jnp.zeros((Kp, Fa), jnp.float32)
    c_pad = c_pad.at[:K, :F].set(centroids.astype(jnp.float32))

    # explicit VMEM budget: inputs are double-buffered by the pipeline, plus the
    # two scratch buffers and the (tiny) output.  Capped well under v7x's 64 MiB.
    bytes_needed = (2 * Np * Fa * 4      # x (double-buffered input)
                    + 2 * Kp * Fa * 4    # centroid init (double-buffered input)
                    + Kp * Fa * 4        # centroid scratch
                    + Np * Fa * 2        # bf16 x scratch
                    + 2 * Np * 4)        # output
    vmem_limit = min(max(bytes_needed + (1 << 20), 4 << 20), 48 << 20)

    out = pl.pallas_call(
        functools.partial(kmeans_kernel, num_iter=num_iter,
                          num_clusters=K, num_points=N),
        out_shape=jax.ShapeDtypeStruct((1, Np), jnp.int32),
        in_specs=[
            pl.BlockSpec((Np, Fa), lambda: (0, 0)),
            pl.BlockSpec((Kp, Fa), lambda: (0, 0)),
        ],
        out_specs=pl.BlockSpec((1, Np), lambda: (0, 0)),
        scratch_shapes=[pltpu.VMEM((Kp, Fa), jnp.float32),
                        pltpu.VMEM((Np, Fa), jnp.bfloat16)],
        compiler_params=pltpu.CompilerParams(vmem_limit_bytes=vmem_limit),
    )(x_pad, c_pad)
    return out[0, :N]


if __name__ == "__main__":
    # small shapes consistent with the module defaults: K=2 clusters, 256-dim points
    N_POINTS = 64
    NUM_CLUSTERS = 2
    NUM_FEATURES = 256
    NUM_ITER = 10

    key = jax.random.PRNGKey(0)
    kx, kc = jax.random.split(key)
    x = jax.random.normal(kx, (N_POINTS, NUM_FEATURES), dtype=jnp.float32)
    # deterministic init mirroring torch.randn(num_clusters, num_features)
    centroids = jax.random.normal(kc, (NUM_CLUSTERS, NUM_FEATURES), dtype=jnp.float32)

    assignments = kmeans_assign(x, centroids, num_iter=NUM_ITER)
    jax.block_until_ready(assignments)
    assert assignments.shape == (N_POINTS,)
    assert bool(jnp.all((assignments >= 0) & (assignments < NUM_CLUSTERS)))
    print("KERNEL_OK")
</pallas_src>

<mosaic_0001>
module attributes {stable_mosaic.version = 11 : i64} {
  func.func @kmeans_kernel(%arg0: memref<128x256xf32, #tpu.memory_space<vmem>>, %arg1: memref<8x256xf32, #tpu.memory_space<vmem>>, %arg2: memref<1x128xi32, #tpu.memory_space<vmem>>, %arg3: memref<8x256xf32, #tpu.memory_space<vmem>>, %arg4: memref<128x256xbf16, #tpu.memory_space<vmem>>) attributes {dimension_semantics = [], scalar_prefetch = 0 : i64, scratch_operands = 2 : i64, tpu.core_type = #tpu.core_type<tc>} {
    %c0 = arith.constant 0 : index
    %c0_0 = arith.constant 0 : index
    %0 = vector.load %arg1[%c0, %c0_0] : memref<8x256xf32, #tpu.memory_space<vmem>>, vector<8x256xf32>
    %c0_1 = arith.constant 0 : index
    %c0_2 = arith.constant 0 : index
    %1 = vector.load %arg3[%c0_1, %c0_2] : memref<8x256xf32, #tpu.memory_space<vmem>>, vector<8x256xf32>
    tpu.vector_store %arg3[%c0_1, %c0_2], %0 {strides = array<i32>} : memref<8x256xf32, #tpu.memory_space<vmem>>, vector<8x256xf32>,
    %c0_3 = arith.constant 0 : index
    %c0_4 = arith.constant 0 : index
    %2 = vector.load %arg0[%c0_3, %c0_4] : memref<128x256xf32, #tpu.memory_space<vmem>>, vector<128x256xf32>
    %3 = arith.truncf %2 : vector<128x256xf32> to vector<128x256xbf16>
    %c0_5 = arith.constant 0 : index
    %c0_6 = arith.constant 0 : index
    %4 = vector.load %arg4[%c0_5, %c0_6] : memref<128x256xbf16, #tpu.memory_space<vmem>>, vector<128x256xbf16>
    tpu.vector_store %arg4[%c0_5, %c0_6], %3 {strides = array<i32>} : memref<128x256xbf16, #tpu.memory_space<vmem>>, vector<128x256xbf16>,
    %5 = tpu.iota {dimensions = array<i32: 0>} : vector<8x128xi32>
    %6 = tpu.iota {dimensions = array<i32: 0>} : vector<8x1xi32>
    %c2_i32 = arith.constant 2 : i32
    %7 = vector.broadcast %c2_i32 : i32 to vector<8x1xi32>
    %8 = arith.cmpi slt, %6, %7 : vector<8x1xi32>
    %cst = arith.constant 0.000000e+00 : f32
    %cst_7 = arith.constant 1.000000e+30 : f32
    %9 = vector.broadcast %cst : f32 to vector<8x1xf32>
    %10 = vector.broadcast %cst_7 : f32 to vector<8x1xf32>
    %11 = arith.select %8, %9, %10 : vector<8x1xi1>, vector<8x1xf32>
    %12 = tpu.iota {dimensions = array<i32: 1>} : vector<8x128xi32>
    %c64_i32 = arith.constant 64 : i32
    %13 = vector.broadcast %c64_i32 : i32 to vector<8x128xi32>
    %14 = arith.cmpi slt, %12, %13 : vector<8x128xi32>
    %c0_i32 = arith.constant 0 : i32
    %15 = vector.broadcast %c0_i32 : i32 to vector<1x128xi32>
    %c0_i32_8 = arith.constant 0 : i32
    %c0_9 = arith.constant 0 : index
    %c0_10 = arith.constant 0 : index
    %16 = vector.load %arg0[%c0_9, %c0_10] : memref<128x256xf32, #tpu.memory_space<vmem>>, vector<128x256xf32>
    %c0_11 = arith.constant 0 : index
    %c0_12 = arith.constant 0 : index
    %17 = vector.load %arg4[%c0_11, %c0_12] : memref<128x256xbf16, #tpu.memory_space<vmem>>, vector<128x256xbf16>
    %c0_13 = arith.constant 0 : index
    %c0_14 = arith.constant 0 : index
    %18 = vector.load %arg3[%c0_13, %c0_14] : memref<8x256xf32, #tpu.memory_space<vmem>>, vector<8x256xf32>
    %19 = arith.truncf %18 : vector<8x256xf32> to vector<8x256xbf16>
    %cst_15 = arith.constant dense<0.000000e+00> : vector<8x128xf32>
    %20 = tpu.matmul %19, %17, %cst_15 {dimension_numbers = #tpu.dot_dimension_numbers<[1], [1], [0], [0], [0, 0, 1, 0], [], []>} : vector<8x256xbf16>, vector<128x256xbf16>, vector<8x128xf32> -> vector<8x128xf32>
    %21 = arith.mulf %18, %18 : vector<8x256xf32>
    %cst_16 = arith.constant dense<0.000000e+00> : vector<8xf32>
    %22 = vector.multi_reduction <add>, %21, %cst_16 [1] : vector<8x256xf32> to vector<8xf32>
    %23 = vector.shape_cast %22 : vector<8xf32> to vector<8x1xf32>
    %cst_17 = arith.constant 2.000000e+00 : f32
    %24 = vector.broadcast %cst_17 : f32 to vector<8x128xf32>
    %25 = arith.mulf %24, %20 : vector<8x128xf32>
    %26 = vector.broadcast %23 : vector<8x1xf32> to vector<8x128xf32>
    %27 = arith.subf %26, %25 : vector<8x128xf32>
    %28 = vector.broadcast %11 : vector<8x1xf32> to vector<8x128xf32>
    %29 = arith.addf %27, %28 : vector<8x128xf32>
    %cst_18 = arith.constant dense<0x7F800000> : vector<128xf32>
    %30 = vector.multi_reduction <minimumf>, %29, %cst_18 [0] : vector<8x128xf32> to vector<128xf32>
    %31 = vector.shape_cast %30 : vector<128xf32> to vector<1x128xf32>
    %32 = vector.broadcast %31 : vector<1x128xf32> to vector<8x128xf32>
    %33 = arith.cmpf ole, %29, %32 : vector<8x128xf32>
    %c8_i32 = arith.constant 8 : i32
    %34 = vector.broadcast %c8_i32 : i32 to vector<8x128xi32>
    %35 = arith.select %33, %5, %34 : vector<8x128xi1>, vector<8x128xi32>
    %cst_19 = arith.constant dense<2147483647> : vector<128xi32>
    %36 = vector.multi_reduction <minsi>, %35, %cst_19 [0] : vector<8x128xi32> to vector<128xi32>
    %37 = vector.shape_cast %36 : vector<128xi32> to vector<1x128xi32>
    %38 = vector.broadcast %37 : vector<1x128xi32> to vector<8x128xi32>
    %39 = arith.cmpi eq, %38, %5 : vector<8x128xi32>
    %40 = arith.andi %39, %14 : vector<8x128xi1>
    %41 = arith.extui %40 : vector<8x128xi1> to vector<8x128xi32>
    %42 = arith.sitofp %41 : vector<8x128xi32> to vector<8x128xf32>
    %cst_20 = arith.constant dense<0.000000e+00> : vector<8x256xf32>
    %43 = tpu.matmul %42, %16, %cst_20 {dimension_numbers = #tpu.dot_dimension_numbers<[1], [0], [0], [1], [0, 0, 1, 1], [], []>} : vector<8x128xf32>, vector<128x256xf32>, vector<8x256xf32> -> vector<8x256xf32>
    %cst_21 = arith.constant dense<0.000000e+00> : vector<8xf32>
    %44 = vector.multi_reduction <add>, %42, %cst_21 [1] : vector<8x128xf32> to vector<8xf32>
    %45 = vector.shape_cast %44 : vector<8xf32> to vector<8x1xf32>
    %cst_22 = arith.constant 1.000000e+00 : f32
    %46 = vector.broadcast %cst_22 : f32 to vector<8x1xf32>
    %47 = arith.maximumf %45, %46 : vector<8x1xf32>
    %48 = tpu.reciprocal %47 {approx = true} : vector<8x1xf32> -> vector<8x1xf32>
    %cst_23 = arith.constant 0.000000e+00 : f32
    %49 = vector.broadcast %cst_23 : f32 to vector<8x1xf32>
    %50 = arith.cmpf ogt, %45, %49 : vector<8x1xf32>
    %51 = vector.broadcast %48 : vector<8x1xf32> to vector<8x256xf32>
    %52 = arith.mulf %43, %51 : vector<8x256xf32>
    %53 = vector.shape_cast %50 : vector<8x1xi1> to vector<8x1xi1>
    %54 = vector.broadcast %53 : vector<8x1xi1> to vector<8x256xi1>
    %55 = arith.select %54, %52, %18 : vector<8x256xi1>, vector<8x256xf32>
    %c0_24 = arith.constant 0 : index
    %c0_25 = arith.constant 0 : index
    %56 = vector.load %arg3[%c0_24, %c0_25] : memref<8x256xf32, #tpu.memory_space<vmem>>, vector<8x256xf32>
    tpu.vector_store %arg3[%c0_24, %c0_25], %55 {strides = array<i32>} : memref<8x256xf32, #tpu.memory_space<vmem>>, vector<8x256xf32>,
    %c1_i32 = arith.constant 1 : i32
    %c0_26 = arith.constant 0 : index
    %c0_27 = arith.constant 0 : index
    %57 = vector.load %arg0[%c0_26, %c0_27] : memref<128x256xf32, #tpu.memory_space<vmem>>, vector<128x256xf32>
    %c0_28 = arith.constant 0 : index
    %c0_29 = arith.constant 0 : index
    %58 = vector.load %arg4[%c0_28, %c0_29] : memref<128x256xbf16, #tpu.memory_space<vmem>>, vector<128x256xbf16>
    %c0_30 = arith.constant 0 : index
    %c0_31 = arith.constant 0 : index
    %59 = vector.load %arg3[%c0_30, %c0_31] : memref<8x256xf32, #tpu.memory_space<vmem>>, vector<8x256xf32>
    %60 = arith.truncf %59 : vector<8x256xf32> to vector<8x256xbf16>
    %cst_32 = arith.constant dense<0.000000e+00> : vector<8x128xf32>
    %61 = tpu.matmul %60, %58, %cst_32 {dimension_numbers = #tpu.dot_dimension_numbers<[1], [1], [0], [0], [0, 0, 1, 0], [], []>} : vector<8x256xbf16>, vector<128x256xbf16>, vector<8x128xf32> -> vector<8x128xf32>
    %62 = arith.mulf %59, %59 : vector<8x256xf32>
    %cst_33 = arith.constant dense<0.000000e+00> : vector<8xf32>
    %63 = vector.multi_reduction <add>, %62, %cst_33 [1] : vector<8x256xf32> to vector<8xf32>
    %64 = vector.shape_cast %63 : vector<8xf32> to vector<8x1xf32>
    %cst_34 = arith.constant 2.000000e+00 : f32
    %65 = vector.broadcast %cst_34 : f32 to vector<8x128xf32>
    %66 = arith.mulf %65, %61 : vector<8x128xf32>
    %67 = vector.broadcast %64 : vector<8x1xf32> to vector<8x128xf32>
    %68 = arith.subf %67, %66 : vector<8x128xf32>
    %69 = vector.broadcast %11 : vector<8x1xf32> to vector<8x128xf32>
    %70 = arith.addf %68, %69 : vector<8x128xf32>
    %cst_35 = arith.constant dense<0x7F800000> : vector<128xf32>
    %71 = vector.multi_reduction <minimumf>, %70, %cst_35 [0] : vector<8x128xf32> to vector<128xf32>
    %72 = vector.shape_cast %71 : vector<128xf32> to vector<1x128xf32>
    %73 = vector.broadcast %72 : vector<1x128xf32> to vector<8x128xf32>
    %74 = arith.cmpf ole, %70, %73 : vector<8x128xf32>
    %c8_i32_36 = arith.constant 8 : i32
    %75 = vector.broadcast %c8_i32_36 : i32 to vector<8x128xi32>
    %76 = arith.select %74, %5, %75 : vector<8x128xi1>, vector<8x128xi32>
    %cst_37 = arith.constant dense<2147483647> : vector<128xi32>
    %77 = vector.multi_reduction <minsi>, %76, %cst_37 [0] : vector<8x128xi32> to vector<128xi32>
    %78 = vector.shape_cast %77 : vector<128xi32> to vector<1x128xi32>
    %79 = vector.broadcast %78 : vector<1x128xi32> to vector<8x128xi32>
    %80 = arith.cmpi eq, %79, %5 : vector<8x128xi32>
    %81 = arith.andi %80, %14 : vector<8x128xi1>
    %82 = arith.extui %81 : vector<8x128xi1> to vector<8x128xi32>
    %83 = arith.sitofp %82 : vector<8x128xi32> to vector<8x128xf32>
    %cst_38 = arith.constant dense<0.000000e+00> : vector<8x256xf32>
    %84 = tpu.matmul %83, %57, %cst_38 {dimension_numbers = #tpu.dot_dimension_numbers<[1], [0], [0], [1], [0, 0, 1, 1], [], []>} : vector<8x128xf32>, vector<128x256xf32>, vector<8x256xf32> -> vector<8x256xf32>
    %cst_39 = arith.constant dense<0.000000e+00> : vector<8xf32>
    %85 = vector.multi_reduction <add>, %83, %cst_39 [1] : vector<8x128xf32> to vector<8xf32>
    %86 = vector.shape_cast %85 : vector<8xf32> to vector<8x1xf32>
    %cst_40 = arith.constant 1.000000e+00 : f32
    %87 = vector.broadcast %cst_40 : f32 to vector<8x1xf32>
    %88 = arith.maximumf %86, %87 : vector<8x1xf32>
    %89 = tpu.reciprocal %88 {approx = true} : vector<8x1xf32> -> vector<8x1xf32>
    %cst_41 = arith.constant 0.000000e+00 : f32
    %90 = vector.broadcast %cst_41 : f32 to vector<8x1xf32>
    %91 = arith.cmpf ogt, %86, %90 : vector<8x1xf32>
    %92 = vector.broadcast %89 : vector<8x1xf32> to vector<8x256xf32>
    %93 = arith.mulf %84, %92 : vector<8x256xf32>
    %94 = vector.shape_cast %91 : vector<8x1xi1> to vector<8x1xi1>
    %95 = vector.broadcast %94 : vector<8x1xi1> to vector<8x256xi1>
    %96 = arith.select %95, %93, %59 : vector<8x256xi1>, vector<8x256xf32>
    %c0_42 = arith.constant 0 : index
    %c0_43 = arith.constant 0 : index
    %97 = vector.load %arg3[%c0_42, %c0_43] : memref<8x256xf32, #tpu.memory_space<vmem>>, vector<8x256xf32>
    tpu.vector_store %arg3[%c0_42, %c0_43], %96 {strides = array<i32>} : memref<8x256xf32, #tpu.memory_space<vmem>>, vector<8x256xf32>,
    %c2_i32_44 = arith.constant 2 : i32
    %c0_45 = arith.constant 0 : index
    %c0_46 = arith.constant 0 : index
    %98 = vector.load %arg0[%c0_45, %c0_46] : memref<128x256xf32, #tpu.memory_space<vmem>>, vector<128x256xf32>
    %c0_47 = arith.constant 0 : index
    %c0_48 = arith.constant 0 : index
    %99 = vector.load %arg4[%c0_47, %c0_48] : memref<128x256xbf16, #tpu.memory_space<vmem>>, vector<128x256xbf16>
    %c0_49 = arith.constant 0 : index
    %c0_50 = arith.constant 0 : index
    %100 = vector.load %arg3[%c0_49, %c0_50] : memref<8x256xf32, #tpu.memory_space<vmem>>, vector<8x256xf32>
    %101 = arith.truncf %100 : vector<8x256xf32> to vector<8x256xbf16>
    %cst_51 = arith.constant dense<0.000000e+00> : vector<8x128xf32>
    %102 = tpu.matmul %101, %99, %cst_51 {dimension_numbers = #tpu.dot_dimension_numbers<[1], [1], [0], [0], [0, 0, 1, 0], [], []>} : vector<8x256xbf16>, vector<128x256xbf16>, vector<8x128xf32> -> vector<8x128xf32>
    %103 = arith.mulf %100, %100 : vector<8x256xf32>
    %cst_52 = arith.constant dense<0.000000e+00> : vector<8xf32>
    %104 = vector.multi_reduction <add>, %103, %cst_52 [1] : vector<8x256xf32> to vector<8xf32>
    %105 = vector.shape_cast %104 : vector<8xf32> to vector<8x1xf32>
    %cst_53 = arith.constant 2.000000e+00 : f32
    %106 = vector.broadcast %cst_53 : f32 to vector<8x128xf32>
    %107 = arith.mulf %106, %102 : vector<8x128xf32>
    %108 = vector.broadcast %105 : vector<8x1xf32> to vector<8x128xf32>
    %109 = arith.subf %108, %107 : vector<8x128xf32>
    %110 = vector.broadcast %11 : vector<8x1xf32> to vector<8x128xf32>
    %111 = arith.addf %109, %110 : vector<8x128xf32>
    %cst_54 = arith.constant dense<0x7F800000> : vector<128xf32>
    %112 = vector.multi_reduction <minimumf>, %111, %cst_54 [0] : vector<8x128xf32> to vector<128xf32>
    %113 = vector.shape_cast %112 : vector<128xf32> to vector<1x128xf32>
    %114 = vector.broadcast %113 : vector<1x128xf32> to vector<8x128xf32>
    %115 = arith.cmpf ole, %111, %114 : vector<8x128xf32>
    %c8_i32_55 = arith.constant 8 : i32
    %116 = vector.broadcast %c8_i32_55 : i32 to vector<8x128xi32>
    %117 = arith.select %115, %5, %116 : vector<8x128xi1>, vector<8x128xi32>
    %cst_56 = arith.constant dense<2147483647> : vector<128xi32>
    %118 = vector.multi_reduction <minsi>, %117, %cst_56 [0] : vector<8x128xi32> to vector<128xi32>
    %119 = vector.shape_cast %118 : vector<128xi32> to vector<1x128xi32>
    %120 = vector.broadcast %119 : vector<1x128xi32> to vector<8x128xi32>
    %121 = arith.cmpi eq, %120, %5 : vector<8x128xi32>
    %122 = arith.andi %121, %14 : vector<8x128xi1>
    %123 = arith.extui %122 : vector<8x128xi1> to vector<8x128xi32>
    %124 = arith.sitofp %123 : vector<8x128xi32> to vector<8x128xf32>
    %cst_57 = arith.constant dense<0.000000e+00> : vector<8x256xf32>
    %125 = tpu.matmul %124, %98, %cst_57 {dimension_numbers = #tpu.dot_dimension_numbers<[1], [0], [0], [1], [0, 0, 1, 1], [], []>} : vector<8x128xf32>, vector<128x256xf32>, vector<8x256xf32> -> vector<8x256xf32>
    %cst_58 = arith.constant dense<0.000000e+00> : vector<8xf32>
    %126 = vector.multi_reduction <add>, %124, %cst_58 [1] : vector<8x128xf32> to vector<8xf32>
    %127 = vector.shape_cast %126 : vector<8xf32> to vector<8x1xf32>
    %cst_59 = arith.constant 1.000000e+00 : f32
    %128 = vector.broadcast %cst_59 : f32 to vector<8x1xf32>
    %129 = arith.maximumf %127, %128 : vector<8x1xf32>
    %130 = tpu.reciprocal %129 {approx = true} : vector<8x1xf32> -> vector<8x1xf32>
    %cst_60 = arith.constant 0.000000e+00 : f32
    %131 = vector.broadcast %cst_60 : f32 to vector<8x1xf32>
    %132 = arith.cmpf ogt, %127, %131 : vector<8x1xf32>
    %133 = vector.broadcast %130 : vector<8x1xf32> to vector<8x256xf32>
    %134 = arith.mulf %125, %133 : vector<8x256xf32>
    %135 = vector.shape_cast %132 : vector<8x1xi1> to vector<8x1xi1>
    %136 = vector.broadcast %135 : vector<8x1xi1> to vector<8x256xi1>
    %137 = arith.select %136, %134, %100 : vector<8x256xi1>, vector<8x256xf32>
    %c0_61 = arith.constant 0 : index
    %c0_62 = arith.constant 0 : index
    %138 = vector.load %arg3[%c0_61, %c0_62] : memref<8x256xf32, #tpu.memory_space<vmem>>, vector<8x256xf32>
    tpu.vector_store %arg3[%c0_61, %c0_62], %137 {strides = array<i32>} : memref<8x256xf32, #tpu.memory_space<vmem>>, vector<8x256xf32>,
    %c3_i32 = arith.constant 3 : i32
    %c0_63 = arith.constant 0 : index
    %c0_64 = arith.constant 0 : index
    %139 = vector.load %arg0[%c0_63, %c0_64] : memref<128x256xf32, #tpu.memory_space<vmem>>, vector<128x256xf32>
    %c0_65 = arith.constant 0 : index
    %c0_66 = arith.constant 0 : index
    %140 = vector.load %arg4[%c0_65, %c0_66] : memref<128x256xbf16, #tpu.memory_space<vmem>>, vector<128x256xbf16>
    %c0_67 = arith.constant 0 : index
    %c0_68 = arith.constant 0 : index
    %141 = vector.load %arg3[%c0_67, %c0_68] : memref<8x256xf32, #tpu.memory_space<vmem>>, vector<8x256xf32>
    %142 = arith.truncf %141 : vector<8x256xf32> to vector<8x256xbf16>
    %cst_69 = arith.constant dense<0.000000e+00> : vector<8x128xf32>
    %143 = tpu.matmul %142, %140, %cst_69 {dimension_numbers = #tpu.dot_dimension_numbers<[1], [1], [0], [0], [0, 0, 1, 0], [], []>} : vector<8x256xbf16>, vector<128x256xbf16>, vector<8x128xf32> -> vector<8x128xf32>
    %144 = arith.mulf %141, %141 : vector<8x256xf32>
    %cst_70 = arith.constant dense<0.000000e+00> : vector<8xf32>
    %145 = vector.multi_reduction <add>, %144, %cst_70 [1] : vector<8x256xf32> to vector<8xf32>
    %146 = vector.shape_cast %145 : vector<8xf32> to vector<8x1xf32>
    %cst_71 = arith.constant 2.000000e+00 : f32
    %147 = vector.broadcast %cst_71 : f32 to vector<8x128xf32>
    %148 = arith.mulf %147, %143 : vector<8x128xf32>
    %149 = vector.broadcast %146 : vector<8x1xf32> to vector<8x128xf32>
    %150 = arith.subf %149, %148 : vector<8x128xf32>
    %151 = vector.broadcast %11 : vector<8x1xf32> to vector<8x128xf32>
    %152 = arith.addf %150, %151 : vector<8x128xf32>
    %cst_72 = arith.constant dense<0x7F800000> : vector<128xf32>
    %153 = vector.multi_reduction <minimumf>, %152, %cst_72 [0] : vector<8x128xf32> to vector<128xf32>
    %154 = vector.shape_cast %153 : vector<128xf32> to vector<1x128xf32>
    %155 = vector.broadcast %154 : vector<1x128xf32> to vector<8x128xf32>
    %156 = arith.cmpf ole, %152, %155 : vector<8x128xf32>
    %c8_i32_73 = arith.constant 8 : i32
    %157 = vector.broadcast %c8_i32_73 : i32 to vector<8x128xi32>
    %158 = arith.select %156, %5, %157 : vector<8x128xi1>, vector<8x128xi32>
    %cst_74 = arith.constant dense<2147483647> : vector<128xi32>
    %159 = vector.multi_reduction <minsi>, %158, %cst_74 [0] : vector<8x128xi32> to vector<128xi32>
    %160 = vector.shape_cast %159 : vector<128xi32> to vector<1x128xi32>
    %161 = vector.broadcast %160 : vector<1x128xi32> to vector<8x128xi32>
    %162 = arith.cmpi eq, %161, %5 : vector<8x128xi32>
    %163 = arith.andi %162, %14 : vector<8x128xi1>
    %164 = arith.extui %163 : vector<8x128xi1> to vector<8x128xi32>
    %165 = arith.sitofp %164 : vector<8x128xi32> to vector<8x128xf32>
    %cst_75 = arith.constant dense<0.000000e+00> : vector<8x256xf32>
    %166 = tpu.matmul %165, %139, %cst_75 {dimension_numbers = #tpu.dot_dimension_numbers<[1], [0], [0], [1], [0, 0, 1, 1], [], []>} : vector<8x128xf32>, vector<128x256xf32>, vector<8x256xf32> -> vector<8x256xf32>
    %cst_76 = arith.constant dense<0.000000e+00> : vector<8xf32>
    %167 = vector.multi_reduction <add>, %165, %cst_76 [1] : vector<8x128xf32> to vector<8xf32>
    %168 = vector.shape_cast %167 : vector<8xf32> to vector<8x1xf32>
    %cst_77 = arith.constant 1.000000e+00 : f32
    %169 = vector.broadcast %cst_77 : f32 to vector<8x1xf32>
    %170 = arith.maximumf %168, %169 : vector<8x1xf32>
    %171 = tpu.reciprocal %170 {approx = true} : vector<8x1xf32> -> vector<8x1xf32>
    %cst_78 = arith.constant 0.000000e+00 : f32
    %172 = vector.broadcast %cst_78 : f32 to vector<8x1xf32>
    %173 = arith.cmpf ogt, %168, %172 : vector<8x1xf32>
    %174 = vector.broadcast %171 : vector<8x1xf32> to vector<8x256xf32>
    %175 = arith.mulf %166, %174 : vector<8x256xf32>
    %176 = vector.shape_cast %173 : vector<8x1xi1> to vector<8x1xi1>
    %177 = vector.broadcast %176 : vector<8x1xi1> to vector<8x256xi1>
    %178 = arith.select %177, %175, %141 : vector<8x256xi1>, vector<8x256xf32>
    %c0_79 = arith.constant 0 : index
    %c0_80 = arith.constant 0 : index
    %179 = vector.load %arg3[%c0_79, %c0_80] : memref<8x256xf32, #tpu.memory_space<vmem>>, vector<8x256xf32>
    tpu.vector_store %arg3[%c0_79, %c0_80], %178 {strides = array<i32>} : memref<8x256xf32, #tpu.memory_space<vmem>>, vector<8x256xf32>,
    %c4_i32 = arith.constant 4 : i32
    %c0_81 = arith.constant 0 : index
    %c0_82 = arith.constant 0 : index
    %180 = vector.load %arg0[%c0_81, %c0_82] : memref<128x256xf32, #tpu.memory_space<vmem>>, vector<128x256xf32>
    %c0_83 = arith.constant 0 : index
    %c0_84 = arith.constant 0 : index
    %181 = vector.load %arg4[%c0_83, %c0_84] : memref<128x256xbf16, #tpu.memory_space<vmem>>, vector<128x256xbf16>
    %c0_85 = arith.constant 0 : index
    %c0_86 = arith.constant 0 : index
    %182 = vector.load %arg3[%c0_85, %c0_86] : memref<8x256xf32, #tpu.memory_space<vmem>>, vector<8x256xf32>
    %183 = arith.truncf %182 : vector<8x256xf32> to vector<8x256xbf16>
    %cst_87 = arith.constant dense<0.000000e+00> : vector<8x128xf32>
    %184 = tpu.matmul %183, %181, %cst_87 {dimension_numbers = #tpu.dot_dimension_numbers<[1], [1], [0], [0], [0, 0, 1, 0], [], []>} : vector<8x256xbf16>, vector<128x256xbf16>, vector<8x128xf32> -> vector<8x128xf32>
    %185 = arith.mulf %182, %182 : vector<8x256xf32>
    %cst_88 = arith.constant dense<0.000000e+00> : vector<8xf32>
    %186 = vector.multi_reduction <add>, %185, %cst_88 [1] : vector<8x256xf32> to vector<8xf32>
    %187 = vector.shape_cast %186 : vector<8xf32> to vector<8x1xf32>
    %cst_89 = arith.constant 2.000000e+00 : f32
    %188 = vector.broadcast %cst_89 : f32 to vector<8x128xf32>
    %189 = arith.mulf %188, %184 : vector<8x128xf32>
    %190 = vector.broadcast %187 : vector<8x1xf32> to vector<8x128xf32>
    %191 = arith.subf %190, %189 : vector<8x128xf32>
    %192 = vector.broadcast %11 : vector<8x1xf32> to vector<8x128xf32>
    %193 = arith.addf %191, %192 : vector<8x128xf32>
    %cst_90 = arith.constant dense<0x7F800000> : vector<128xf32>
    %194 = vector.multi_reduction <minimumf>, %193, %cst_90 [0] : vector<8x128xf32> to vector<128xf32>
    %195 = vector.shape_cast %194 : vector<128xf32> to vector<1x128xf32>
    %196 = vector.broadcast %195 : vector<1x128xf32> to vector<8x128xf32>
    %197 = arith.cmpf ole, %193, %196 : vector<8x128xf32>
    %c8_i32_91 = arith.constant 8 : i32
    %198 = vector.broadcast %c8_i32_91 : i32 to vector<8x128xi32>
    %199 = arith.select %197, %5, %198 : vector<8x128xi1>, vector<8x128xi32>
    %cst_92 = arith.constant dense<2147483647> : vector<128xi32>
    %200 = vector.multi_reduction <minsi>, %199, %cst_92 [0] : vector<8x128xi32> to vector<128xi32>
    %201 = vector.shape_cast %200 : vector<128xi32> to vector<1x128xi32>
    %202 = vector.broadcast %201 : vector<1x128xi32> to vector<8x128xi32>
    %203 = arith.cmpi eq, %202, %5 : vector<8x128xi32>
    %204 = arith.andi %203, %14 : vector<8x128xi1>
    %205 = arith.extui %204 : vector<8x128xi1> to vector<8x128xi32>
    %206 = arith.sitofp %205 : vector<8x128xi32> to vector<8x128xf32>
    %cst_93 = arith.constant dense<0.000000e+00> : vector<8x256xf32>
    %207 = tpu.matmul %206, %180, %cst_93 {dimension_numbers = #tpu.dot_dimension_numbers<[1], [0], [0], [1], [0, 0, 1, 1], [], []>} : vector<8x128xf32>, vector<128x256xf32>, vector<8x256xf32> -> vector<8x256xf32>
    %cst_94 = arith.constant dense<0.000000e+00> : vector<8xf32>
    %208 = vector.multi_reduction <add>, %206, %cst_94 [1] : vector<8x128xf32> to vector<8xf32>
    %209 = vector.shape_cast %208 : vector<8xf32> to vector<8x1xf32>
    %cst_95 = arith.constant 1.000000e+00 : f32
    %210 = vector.broadcast %cst_95 : f32 to vector<8x1xf32>
    %211 = arith.maximumf %209, %210 : vector<8x1xf32>
    %212 = tpu.reciprocal %211 {approx = true} : vector<8x1xf32> -> vector<8x1xf32>
    %cst_96 = arith.constant 0.000000e+00 : f32
    %213 = vector.broadcast %cst_96 : f32 to vector<8x1xf32>
    %214 = arith.cmpf ogt, %209, %213 : vector<8x1xf32>
    %215 = vector.broadcast %212 : vector<8x1xf32> to vector<8x256xf32>
    %216 = arith.mulf %207, %215 : vector<8x256xf32>
    %217 = vector.shape_cast %214 : vector<8x1xi1> to vector<8x1xi1>
    %218 = vector.broadcast %217 : vector<8x1xi1> to vector<8x256xi1>
    %219 = arith.select %218, %216, %182 : vector<8x256xi1>, vector<8x256xf32>
    %c0_97 = arith.constant 0 : index
    %c0_98 = arith.constant 0 : index
    %220 = vector.load %arg3[%c0_97, %c0_98] : memref<8x256xf32, #tpu.memory_space<vmem>>, vector<8x256xf32>
    tpu.vector_store %arg3[%c0_97, %c0_98], %219 {strides = array<i32>} : memref<8x256xf32, #tpu.memory_space<vmem>>, vector<8x256xf32>,
    %c5_i32 = arith.constant 5 : i32
    %c0_99 = arith.constant 0 : index
    %c0_100 = arith.constant 0 : index
    %221 = vector.load %arg0[%c0_99, %c0_100] : memref<128x256xf32, #tpu.memory_space<vmem>>, vector<128x256xf32>
    %c0_101 = arith.constant 0 : index
    %c0_102 = arith.constant 0 : index
    %222 = vector.load %arg4[%c0_101, %c0_102] : memref<128x256xbf16, #tpu.memory_space<vmem>>, vector<128x256xbf16>
    %c0_103 = arith.constant 0 : index
    %c0_104 = arith.constant 0 : index
    %223 = vector.load %arg3[%c0_103, %c0_104] : memref<8x256xf32, #tpu.memory_space<vmem>>, vector<8x256xf32>
    %224 = arith.truncf %223 : vector<8x256xf32> to vector<8x256xbf16>
    %cst_105 = arith.constant dense<0.000000e+00> : vector<8x128xf32>
    %225 = tpu.matmul %224, %222, %cst_105 {dimension_numbers = #tpu.dot_dimension_numbers<[1], [1], [0], [0], [0, 0, 1, 0], [], []>} : vector<8x256xbf16>, vector<128x256xbf16>, vector<8x128xf32> -> vector<8x128xf32>
    %226 = arith.mulf %223, %223 : vector<8x256xf32>
    %cst_106 = arith.constant dense<0.000000e+00> : vector<8xf32>
    %227 = vector.multi_reduction <add>, %226, %cst_106 [1] : vector<8x256xf32> to vector<8xf32>
    %228 = vector.shape_cast %227 : vector<8xf32> to vector<8x1xf32>
    %cst_107 = arith.constant 2.000000e+00 : f32
    %229 = vector.broadcast %cst_107 : f32 to vector<8x128xf32>
    %230 = arith.mulf %229, %225 : vector<8x128xf32>
    %231 = vector.broadcast %228 : vector<8x1xf32> to vector<8x128xf32>
    %232 = arith.subf %231, %230 : vector<8x128xf32>
    %233 = vector.broadcast %11 : vector<8x1xf32> to vector<8x128xf32>
    %234 = arith.addf %232, %233 : vector<8x128xf32>
    %cst_108 = arith.constant dense<0x7F800000> : vector<128xf32>
    %235 = vector.multi_reduction <minimumf>, %234, %cst_108 [0] : vector<8x128xf32> to vector<128xf32>
    %236 = vector.shape_cast %235 : vector<128xf32> to vector<1x128xf32>
    %237 = vector.broadcast %236 : vector<1x128xf32> to vector<8x128xf32>
    %238 = arith.cmpf ole, %234, %237 : vector<8x128xf32>
    %c8_i32_109 = arith.constant 8 : i32
    %239 = vector.broadcast %c8_i32_109 : i32 to vector<8x128xi32>
    %240 = arith.select %238, %5, %239 : vector<8x128xi1>, vector<8x128xi32>
    %cst_110 = arith.constant dense<2147483647> : vector<128xi32>
    %241 = vector.multi_reduction <minsi>, %240, %cst_110 [0] : vector<8x128xi32> to vector<128xi32>
    %242 = vector.shape_cast %241 : vector<128xi32> to vector<1x128xi32>
    %243 = vector.broadcast %242 : vector<1x128xi32> to vector<8x128xi32>
    %244 = arith.cmpi eq, %243, %5 : vector<8x128xi32>
    %245 = arith.andi %244, %14 : vector<8x128xi1>
    %246 = arith.extui %245 : vector<8x128xi1> to vector<8x128xi32>
    %247 = arith.sitofp %246 : vector<8x128xi32> to vector<8x128xf32>
    %cst_111 = arith.constant dense<0.000000e+00> : vector<8x256xf32>
    %248 = tpu.matmul %247, %221, %cst_111 {dimension_numbers = #tpu.dot_dimension_numbers<[1], [0], [0], [1], [0, 0, 1, 1], [], []>} : vector<8x128xf32>, vector<128x256xf32>, vector<8x256xf32> -> vector<8x256xf32>
    %cst_112 = arith.constant dense<0.000000e+00> : vector<8xf32>
    %249 = vector.multi_reduction <add>, %247, %cst_112 [1] : vector<8x128xf32> to vector<8xf32>
    %250 = vector.shape_cast %249 : vector<8xf32> to vector<8x1xf32>
    %cst_113 = arith.constant 1.000000e+00 : f32
    %251 = vector.broadcast %cst_113 : f32 to vector<8x1xf32>
    %252 = arith.maximumf %250, %251 : vector<8x1xf32>
    %253 = tpu.reciprocal %252 {approx = true} : vector<8x1xf32> -> vector<8x1xf32>
    %cst_114 = arith.constant 0.000000e+00 : f32
    %254 = vector.broadcast %cst_114 : f32 to vector<8x1xf32>
    %255 = arith.cmpf ogt, %250, %254 : vector<8x1xf32>
    %256 = vector.broadcast %253 : vector<8x1xf32> to vector<8x256xf32>
    %257 = arith.mulf %248, %256 : vector<8x256xf32>
    %258 = vector.shape_cast %255 : vector<8x1xi1> to vector<8x1xi1>
    %259 = vector.broadcast %258 : vector<8x1xi1> to vector<8x256xi1>
    %260 = arith.select %259, %257, %223 : vector<8x256xi1>, vector<8x256xf32>
    %c0_115 = arith.constant 0 : index
    %c0_116 = arith.constant 0 : index
    %261 = vector.load %arg3[%c0_115, %c0_116] : memref<8x256xf32, #tpu.memory_space<vmem>>, vector<8x256xf32>
    tpu.vector_store %arg3[%c0_115, %c0_116], %260 {strides = array<i32>} : memref<8x256xf32, #tpu.memory_space<vmem>>, vector<8x256xf32>,
    %c6_i32 = arith.constant 6 : i32
    %c0_117 = arith.constant 0 : index
    %c0_118 = arith.constant 0 : index
    %262 = vector.load %arg0[%c0_117, %c0_118] : memref<128x256xf32, #tpu.memory_space<vmem>>, vector<128x256xf32>
    %c0_119 = arith.constant 0 : index
    %c0_120 = arith.constant 0 : index
    %263 = vector.load %arg4[%c0_119, %c0_120] : memref<128x256xbf16, #tpu.memory_space<vmem>>, vector<128x256xbf16>
    %c0_121 = arith.constant 0 : index
    %c0_122 = arith.constant 0 : index
    %264 = vector.load %arg3[%c0_121, %c0_122] : memref<8x256xf32, #tpu.memory_space<vmem>>, vector<8x256xf32>
    %265 = arith.truncf %264 : vector<8x256xf32> to vector<8x256xbf16>
    %cst_123 = arith.constant dense<0.000000e+00> : vector<8x128xf32>
    %266 = tpu.matmul %265, %263, %cst_123 {dimension_numbers = #tpu.dot_dimension_numbers<[1], [1], [0], [0], [0, 0, 1, 0], [], []>} : vector<8x256xbf16>, vector<128x256xbf16>, vector<8x128xf32> -> vector<8x128xf32>
    %267 = arith.mulf %264, %264 : vector<8x256xf32>
    %cst_124 = arith.constant dense<0.000000e+00> : vector<8xf32>
    %268 = vector.multi_reduction <add>, %267, %cst_124 [1] : vector<8x256xf32> to vector<8xf32>
    %269 = vector.shape_cast %268 : vector<8xf32> to vector<8x1xf32>
    %cst_125 = arith.constant 2.000000e+00 : f32
    %270 = vector.broadcast %cst_125 : f32 to vector<8x128xf32>
    %271 = arith.mulf %270, %266 : vector<8x128xf32>
    %272 = vector.broadcast %269 : vector<8x1xf32> to vector<8x128xf32>
    %273 = arith.subf %272, %271 : vector<8x128xf32>
    %274 = vector.broadcast %11 : vector<8x1xf32> to vector<8x128xf32>
    %275 = arith.addf %273, %274 : vector<8x128xf32>
    %cst_126 = arith.constant dense<0x7F800000> : vector<128xf32>
    %276 = vector.multi_reduction <minimumf>, %275, %cst_126 [0] : vector<8x128xf32> to vector<128xf32>
    %277 = vector.shape_cast %276 : vector<128xf32> to vector<1x128xf32>
    %278 = vector.broadcast %277 : vector<1x128xf32> to vector<8x128xf32>
    %279 = arith.cmpf ole, %275, %278 : vector<8x128xf32>
    %c8_i32_127 = arith.constant 8 : i32
    %280 = vector.broadcast %c8_i32_127 : i32 to vector<8x128xi32>
    %281 = arith.select %279, %5, %280 : vector<8x128xi1>, vector<8x128xi32>
    %cst_128 = arith.constant dense<2147483647> : vector<128xi32>
    %282 = vector.multi_reduction <minsi>, %281, %cst_128 [0] : vector<8x128xi32> to vector<128xi32>
    %283 = vector.shape_cast %282 : vector<128xi32> to vector<1x128xi32>
    %284 = vector.broadcast %283 : vector<1x128xi32> to vector<8x128xi32>
    %285 = arith.cmpi eq, %284, %5 : vector<8x128xi32>
    %286 = arith.andi %285, %14 : vector<8x128xi1>
    %287 = arith.extui %286 : vector<8x128xi1> to vector<8x128xi32>
    %288 = arith.sitofp %287 : vector<8x128xi32> to vector<8x128xf32>
    %cst_129 = arith.constant dense<0.000000e+00> : vector<8x256xf32>
    %289 = tpu.matmul %288, %262, %cst_129 {dimension_numbers = #tpu.dot_dimension_numbers<[1], [0], [0], [1], [0, 0, 1, 1], [], []>} : vector<8x128xf32>, vector<128x256xf32>, vector<8x256xf32> -> vector<8x256xf32>
    %cst_130 = arith.constant dense<0.000000e+00> : vector<8xf32>
    %290 = vector.multi_reduction <add>, %288, %cst_130 [1] : vector<8x128xf32> to vector<8xf32>
    %291 = vector.shape_cast %290 : vector<8xf32> to vector<8x1xf32>
    %cst_131 = arith.constant 1.000000e+00 : f32
    %292 = vector.broadcast %cst_131 : f32 to vector<8x1xf32>
    %293 = arith.maximumf %291, %292 : vector<8x1xf32>
    %294 = tpu.reciprocal %293 {approx = true} : vector<8x1xf32> -> vector<8x1xf32>
    %cst_132 = arith.constant 0.000000e+00 : f32
    %295 = vector.broadcast %cst_132 : f32 to vector<8x1xf32>
    %296 = arith.cmpf ogt, %291, %295 : vector<8x1xf32>
    %297 = vector.broadcast %294 : vector<8x1xf32> to vector<8x256xf32>
    %298 = arith.mulf %289, %297 : vector<8x256xf32>
    %299 = vector.shape_cast %296 : vector<8x1xi1> to vector<8x1xi1>
    %300 = vector.broadcast %299 : vector<8x1xi1> to vector<8x256xi1>
    %301 = arith.select %300, %298, %264 : vector<8x256xi1>, vector<8x256xf32>
    %c0_133 = arith.constant 0 : index
    %c0_134 = arith.constant 0 : index
    %302 = vector.load %arg3[%c0_133, %c0_134] : memref<8x256xf32, #tpu.memory_space<vmem>>, vector<8x256xf32>
    tpu.vector_store %arg3[%c0_133, %c0_134], %301 {strides = array<i32>} : memref<8x256xf32, #tpu.memory_space<vmem>>, vector<8x256xf32>,
    %c7_i32 = arith.constant 7 : i32
    %c0_135 = arith.constant 0 : index
    %c0_136 = arith.constant 0 : index
    %303 = vector.load %arg0[%c0_135, %c0_136] : memref<128x256xf32, #tpu.memory_space<vmem>>, vector<128x256xf32>
    %c0_137 = arith.constant 0 : index
    %c0_138 = arith.constant 0 : index
    %304 = vector.load %arg4[%c0_137, %c0_138] : memref<128x256xbf16, #tpu.memory_space<vmem>>, vector<128x256xbf16>
    %c0_139 = arith.constant 0 : index
    %c0_140 = arith.constant 0 : index
    %305 = vector.load %arg3[%c0_139, %c0_140] : memref<8x256xf32, #tpu.memory_space<vmem>>, vector<8x256xf32>
    %306 = arith.truncf %305 : vector<8x256xf32> to vector<8x256xbf16>
    %cst_141 = arith.constant dense<0.000000e+00> : vector<8x128xf32>
    %307 = tpu.matmul %306, %304, %cst_141 {dimension_numbers = #tpu.dot_dimension_numbers<[1], [1], [0], [0], [0, 0, 1, 0], [], []>} : vector<8x256xbf16>, vector<128x256xbf16>, vector<8x128xf32> -> vector<8x128xf32>
    %308 = arith.mulf %305, %305 : vector<8x256xf32>
    %cst_142 = arith.constant dense<0.000000e+00> : vector<8xf32>
    %309 = vector.multi_reduction <add>, %308, %cst_142 [1] : vector<8x256xf32> to vector<8xf32>
    %310 = vector.shape_cast %309 : vector<8xf32> to vector<8x1xf32>
    %cst_143 = arith.constant 2.000000e+00 : f32
    %311 = vector.broadcast %cst_143 : f32 to vector<8x128xf32>
    %312 = arith.mulf %311, %307 : vector<8x128xf32>
    %313 = vector.broadcast %310 : vector<8x1xf32> to vector<8x128xf32>
    %314 = arith.subf %313, %312 : vector<8x128xf32>
    %315 = vector.broadcast %11 : vector<8x1xf32> to vector<8x128xf32>
    %316 = arith.addf %314, %315 : vector<8x128xf32>
    %cst_144 = arith.constant dense<0x7F800000> : vector<128xf32>
    %317 = vector.multi_reduction <minimumf>, %316, %cst_144 [0] : vector<8x128xf32> to vector<128xf32>
    %318 = vector.shape_cast %317 : vector<128xf32> to vector<1x128xf32>
    %319 = vector.broadcast %318 : vector<1x128xf32> to vector<8x128xf32>
    %320 = arith.cmpf ole, %316, %319 : vector<8x128xf32>
    %c8_i32_145 = arith.constant 8 : i32
    %321 = vector.broadcast %c8_i32_145 : i32 to vector<8x128xi32>
    %322 = arith.select %320, %5, %321 : vector<8x128xi1>, vector<8x128xi32>
    %cst_146 = arith.constant dense<2147483647> : vector<128xi32>
    %323 = vector.multi_reduction <minsi>, %322, %cst_146 [0] : vector<8x128xi32> to vector<128xi32>
    %324 = vector.shape_cast %323 : vector<128xi32> to vector<1x128xi32>
    %325 = vector.broadcast %324 : vector<1x128xi32> to vector<8x128xi32>
    %326 = arith.cmpi eq, %325, %5 : vector<8x128xi32>
    %327 = arith.andi %326, %14 : vector<8x128xi1>
    %328 = arith.extui %327 : vector<8x128xi1> to vector<8x128xi32>
    %329 = arith.sitofp %328 : vector<8x128xi32> to vector<8x128xf32>
    %cst_147 = arith.constant dense<0.000000e+00> : vector<8x256xf32>
    %330 = tpu.matmul %329, %303, %cst_147 {dimension_numbers = #tpu.dot_dimension_numbers<[1], [0], [0], [1], [0, 0, 1, 1], [], []>} : vector<8x128xf32>, vector<128x256xf32>, vector<8x256xf32> -> vector<8x256xf32>
    %cst_148 = arith.constant dense<0.000000e+00> : vector<8xf32>
    %331 = vector.multi_reduction <add>, %329, %cst_148 [1] : vector<8x128xf32> to vector<8xf32>
    %332 = vector.shape_cast %331 : vector<8xf32> to vector<8x1xf32>
    %cst_149 = arith.constant 1.000000e+00 : f32
    %333 = vector.broadcast %cst_149 : f32 to vector<8x1xf32>
    %334 = arith.maximumf %332, %333 : vector<8x1xf32>
    %335 = tpu.reciprocal %334 {approx = true} : vector<8x1xf32> -> vector<8x1xf32>
    %cst_150 = arith.constant 0.000000e+00 : f32
    %336 = vector.broadcast %cst_150 : f32 to vector<8x1xf32>
    %337 = arith.cmpf ogt, %332, %336 : vector<8x1xf32>
    %338 = vector.broadcast %335 : vector<8x1xf32> to vector<8x256xf32>
    %339 = arith.mulf %330, %338 : vector<8x256xf32>
    %340 = vector.shape_cast %337 : vector<8x1xi1> to vector<8x1xi1>
    %341 = vector.broadcast %340 : vector<8x1xi1> to vector<8x256xi1>
    %342 = arith.select %341, %339, %305 : vector<8x256xi1>, vector<8x256xf32>
    %c0_151 = arith.constant 0 : index
    %c0_152 = arith.constant 0 : index
    %343 = vector.load %arg3[%c0_151, %c0_152] : memref<8x256xf32, #tpu.memory_space<vmem>>, vector<8x256xf32>
    tpu.vector_store %arg3[%c0_151, %c0_152], %342 {strides = array<i32>} : memref<8x256xf32, #tpu.memory_space<vmem>>, vector<8x256xf32>,
    %c8_i32_153 = arith.constant 8 : i32
    %c0_154 = arith.constant 0 : index
    %c0_155 = arith.constant 0 : index
    %344 = vector.load %arg0[%c0_154, %c0_155] : memref<128x256xf32, #tpu.memory_space<vmem>>, vector<128x256xf32>
    %c0_156 = arith.constant 0 : index
    %c0_157 = arith.constant 0 : index
    %345 = vector.load %arg4[%c0_156, %c0_157] : memref<128x256xbf16, #tpu.memory_space<vmem>>, vector<128x256xbf16>
    %c0_158 = arith.constant 0 : index
    %c0_159 = arith.constant 0 : index
    %346 = vector.load %arg3[%c0_158, %c0_159] : memref<8x256xf32, #tpu.memory_space<vmem>>, vector<8x256xf32>
    %347 = arith.truncf %346 : vector<8x256xf32> to vector<8x256xbf16>
    %cst_160 = arith.constant dense<0.000000e+00> : vector<8x128xf32>
    %348 = tpu.matmul %347, %345, %cst_160 {dimension_numbers = #tpu.dot_dimension_numbers<[1], [1], [0], [0], [0, 0, 1, 0], [], []>} : vector<8x256xbf16>, vector<128x256xbf16>, vector<8x128xf32> -> vector<8x128xf32>
    %349 = arith.mulf %346, %346 : vector<8x256xf32>
    %cst_161 = arith.constant dense<0.000000e+00> : vector<8xf32>
    %350 = vector.multi_reduction <add>, %349, %cst_161 [1] : vector<8x256xf32> to vector<8xf32>
    %351 = vector.shape_cast %350 : vector<8xf32> to vector<8x1xf32>
    %cst_162 = arith.constant 2.000000e+00 : f32
    %352 = vector.broadcast %cst_162 : f32 to vector<8x128xf32>
    %353 = arith.mulf %352, %348 : vector<8x128xf32>
    %354 = vector.broadcast %351 : vector<8x1xf32> to vector<8x128xf32>
    %355 = arith.subf %354, %353 : vector<8x128xf32>
    %356 = vector.broadcast %11 : vector<8x1xf32> to vector<8x128xf32>
    %357 = arith.addf %355, %356 : vector<8x128xf32>
    %cst_163 = arith.constant dense<0x7F800000> : vector<128xf32>
    %358 = vector.multi_reduction <minimumf>, %357, %cst_163 [0] : vector<8x128xf32> to vector<128xf32>
    %359 = vector.shape_cast %358 : vector<128xf32> to vector<1x128xf32>
    %360 = vector.broadcast %359 : vector<1x128xf32> to vector<8x128xf32>
    %361 = arith.cmpf ole, %357, %360 : vector<8x128xf32>
    %c8_i32_164 = arith.constant 8 : i32
    %362 = vector.broadcast %c8_i32_164 : i32 to vector<8x128xi32>
    %363 = arith.select %361, %5, %362 : vector<8x128xi1>, vector<8x128xi32>
    %cst_165 = arith.constant dense<2147483647> : vector<128xi32>
    %364 = vector.multi_reduction <minsi>, %363, %cst_165 [0] : vector<8x128xi32> to vector<128xi32>
    %365 = vector.shape_cast %364 : vector<128xi32> to vector<1x128xi32>
    %366 = vector.broadcast %365 : vector<1x128xi32> to vector<8x128xi32>
    %367 = arith.cmpi eq, %366, %5 : vector<8x128xi32>
    %368 = arith.andi %367, %14 : vector<8x128xi1>
    %369 = arith.extui %368 : vector<8x128xi1> to vector<8x128xi32>
    %370 = arith.sitofp %369 : vector<8x128xi32> to vector<8x128xf32>
    %cst_166 = arith.constant dense<0.000000e+00> : vector<8x256xf32>
    %371 = tpu.matmul %370, %344, %cst_166 {dimension_numbers = #tpu.dot_dimension_numbers<[1], [0], [0], [1], [0, 0, 1, 1], [], []>} : vector<8x128xf32>, vector<128x256xf32>, vector<8x256xf32> -> vector<8x256xf32>
    %cst_167 = arith.constant dense<0.000000e+00> : vector<8xf32>
    %372 = vector.multi_reduction <add>, %370, %cst_167 [1] : vector<8x128xf32> to vector<8xf32>
    %373 = vector.shape_cast %372 : vector<8xf32> to vector<8x1xf32>
    %cst_168 = arith.constant 1.000000e+00 : f32
    %374 = vector.broadcast %cst_168 : f32 to vector<8x1xf32>
    %375 = arith.maximumf %373, %374 : vector<8x1xf32>
    %376 = tpu.reciprocal %375 {approx = true} : vector<8x1xf32> -> vector<8x1xf32>
    %cst_169 = arith.constant 0.000000e+00 : f32
    %377 = vector.broadcast %cst_169 : f32 to vector<8x1xf32>
    %378 = arith.cmpf ogt, %373, %377 : vector<8x1xf32>
    %379 = vector.broadcast %376 : vector<8x1xf32> to vector<8x256xf32>
    %380 = arith.mulf %371, %379 : vector<8x256xf32>
    %381 = vector.shape_cast %378 : vector<8x1xi1> to vector<8x1xi1>
    %382 = vector.broadcast %381 : vector<8x1xi1> to vector<8x256xi1>
    %383 = arith.select %382, %380, %346 : vector<8x256xi1>, vector<8x256xf32>
    %c0_170 = arith.constant 0 : index
    %c0_171 = arith.constant 0 : index
    %384 = vector.load %arg3[%c0_170, %c0_171] : memref<8x256xf32, #tpu.memory_space<vmem>>, vector<8x256xf32>
    tpu.vector_store %arg3[%c0_170, %c0_171], %383 {strides = array<i32>} : memref<8x256xf32, #tpu.memory_space<vmem>>, vector<8x256xf32>,
    %c9_i32 = arith.constant 9 : i32
    %c0_172 = arith.constant 0 : index
    %c0_173 = arith.constant 0 : index
    %385 = vector.load %arg0[%c0_172, %c0_173] : memref<128x256xf32, #tpu.memory_space<vmem>>, vector<128x256xf32>
    %c0_174 = arith.constant 0 : index
    %c0_175 = arith.constant 0 : index
    %386 = vector.load %arg4[%c0_174, %c0_175] : memref<128x256xbf16, #tpu.memory_space<vmem>>, vector<128x256xbf16>
    %c0_176 = arith.constant 0 : index
    %c0_177 = arith.constant 0 : index
    %387 = vector.load %arg3[%c0_176, %c0_177] : memref<8x256xf32, #tpu.memory_space<vmem>>, vector<8x256xf32>
    %388 = arith.truncf %387 : vector<8x256xf32> to vector<8x256xbf16>
    %cst_178 = arith.constant dense<0.000000e+00> : vector<8x128xf32>
    %389 = tpu.matmul %388, %386, %cst_178 {dimension_numbers = #tpu.dot_dimension_numbers<[1], [1], [0], [0], [0, 0, 1, 0], [], []>} : vector<8x256xbf16>, vector<128x256xbf16>, vector<8x128xf32> -> vector<8x128xf32>
    %390 = arith.mulf %387, %387 : vector<8x256xf32>
    %cst_179 = arith.constant dense<0.000000e+00> : vector<8xf32>
    %391 = vector.multi_reduction <add>, %390, %cst_179 [1] : vector<8x256xf32> to vector<8xf32>
    %392 = vector.shape_cast %391 : vector<8xf32> to vector<8x1xf32>
    %cst_180 = arith.constant 2.000000e+00 : f32
    %393 = vector.broadcast %cst_180 : f32 to vector<8x128xf32>
    %394 = arith.mulf %393, %389 : vector<8x128xf32>
    %395 = vector.broadcast %392 : vector<8x1xf32> to vector<8x128xf32>
    %396 = arith.subf %395, %394 : vector<8x128xf32>
    %397 = vector.broadcast %11 : vector<8x1xf32> to vector<8x128xf32>
    %398 = arith.addf %396, %397 : vector<8x128xf32>
    %cst_181 = arith.constant dense<0x7F800000> : vector<128xf32>
    %399 = vector.multi_reduction <minimumf>, %398, %cst_181 [0] : vector<8x128xf32> to vector<128xf32>
    %400 = vector.shape_cast %399 : vector<128xf32> to vector<1x128xf32>
    %401 = vector.broadcast %400 : vector<1x128xf32> to vector<8x128xf32>
    %402 = arith.cmpf ole, %398, %401 : vector<8x128xf32>
    %c8_i32_182 = arith.constant 8 : i32
    %403 = vector.broadcast %c8_i32_182 : i32 to vector<8x128xi32>
    %404 = arith.select %402, %5, %403 : vector<8x128xi1>, vector<8x128xi32>
    %cst_183 = arith.constant dense<2147483647> : vector<128xi32>
    %405 = vector.multi_reduction <minsi>, %404, %cst_183 [0] : vector<8x128xi32> to vector<128xi32>
    %406 = vector.shape_cast %405 : vector<128xi32> to vector<1x128xi32>
    %407 = vector.broadcast %406 : vector<1x128xi32> to vector<8x128xi32>
    %408 = arith.cmpi eq, %407, %5 : vector<8x128xi32>
    %409 = arith.andi %408, %14 : vector<8x128xi1>
    %410 = arith.extui %409 : vector<8x128xi1> to vector<8x128xi32>
    %411 = arith.sitofp %410 : vector<8x128xi32> to vector<8x128xf32>
    %cst_184 = arith.constant dense<0.000000e+00> : vector<8x256xf32>
    %412 = tpu.matmul %411, %385, %cst_184 {dimension_numbers = #tpu.dot_dimension_numbers<[1], [0], [0], [1], [0, 0, 1, 1], [], []>} : vector<8x128xf32>, vector<128x256xf32>, vector<8x256xf32> -> vector<8x256xf32>
    %cst_185 = arith.constant dense<0.000000e+00> : vector<8xf32>
    %413 = vector.multi_reduction <add>, %411, %cst_185 [1] : vector<8x128xf32> to vector<8xf32>
    %414 = vector.shape_cast %413 : vector<8xf32> to vector<8x1xf32>
    %cst_186 = arith.constant 1.000000e+00 : f32
    %415 = vector.broadcast %cst_186 : f32 to vector<8x1xf32>
    %416 = arith.maximumf %414, %415 : vector<8x1xf32>
    %417 = tpu.reciprocal %416 {approx = true} : vector<8x1xf32> -> vector<8x1xf32>
    %cst_187 = arith.constant 0.000000e+00 : f32
    %418 = vector.broadcast %cst_187 : f32 to vector<8x1xf32>
    %419 = arith.cmpf ogt, %414, %418 : vector<8x1xf32>
    %420 = vector.broadcast %417 : vector<8x1xf32> to vector<8x256xf32>
    %421 = arith.mulf %412, %420 : vector<8x256xf32>
    %422 = vector.shape_cast %419 : vector<8x1xi1> to vector<8x1xi1>
    %423 = vector.broadcast %422 : vector<8x1xi1> to vector<8x256xi1>
    %424 = arith.select %423, %421, %387 : vector<8x256xi1>, vector<8x256xf32>
    %c0_188 = arith.constant 0 : index
    %c0_189 = arith.constant 0 : index
    %425 = vector.load %arg3[%c0_188, %c0_189] : memref<8x256xf32, #tpu.memory_space<vmem>>, vector<8x256xf32>
    tpu.vector_store %arg3[%c0_188, %c0_189], %424 {strides = array<i32>} : memref<8x256xf32, #tpu.memory_space<vmem>>, vector<8x256xf32>,
    %c0_190 = arith.constant 0 : index
    %c0_191 = arith.constant 0 : index
    %426 = vector.load %arg2[%c0_190, %c0_191] : memref<1x128xi32, #tpu.memory_space<vmem>>, vector<1x128xi32>
    tpu.vector_store %arg2[%c0_190, %c0_191], %406 {strides = array<i32>} : memref<1x128xi32, #tpu.memory_space<vmem>>, vector<1x128xi32>,
    return
  }
}

</mosaic_0001>

<bundles_post_ra>
// kernel: tpu_custom_call.1
= control target key start
LH: loop header
LB: loop body
LE: loop exit
PB: predicated region body
PF: predicated region fallthrough
CT: control target
= control target key end

     0   :  { %7 = vsyncpa [#allocation5], 0  ;;  %s3243_s0 = inlined_call_operand.hbm [shape: f32[128,256], index: 0, kind: input, shape index: {}]   ;;  %s3244_s1 = inlined_call_operand.hbm [shape: f32[8,256], index: 1, kind: input, shape index: {}]   ;;  %s3245_s2 = inlined_call_operand.hbm [shape: s32[1,128], index: 2, kind: output, shape index: {}]  }
   0x1   :  { %8 = vsyncpa [#allocation8], 0 }
   0x2   :  { %9 = vsyncpa [#allocation6], 0  ;;  %s2619_s9 = smov [#allocation4]   ;;  %s2547_s13 = scalar_lea.hbm %s3243_s0, 4096 }
   0x3   :  { %s15_s10 = sshll.u32 %s2619_s9, 4  ;;  %p2548_p0 = scmp.ne.s32.totalorder %s3243_s0, %s2547_s13  ;;  %s16_s10 = int_to_ptr.vmem [resolvable:$true] %s15_s10 }
   0x4   :  { %p2551_p1 = scmp.lt.u32.totalorder %s2547_s13, %s3243_s0 }
   0x6   :  { %p2553_p2 = pnand %p2551_p1, %p2548_p0 }
   0x8   :  { %2556 = shalt.err (!%p2553_p2)
}
   0x9   :  { %s2557_s18 = scalar_lea.vmem %s16_s10, 4096  ;;  %p2562_p4 = scmp.lt.s32.totalorder %s16_s10, %s16_s10 }
   0xa   :  { %p2558_p3 = scmp.ne.s32.totalorder %s16_s10, %s2557_s18  ;;  %p2563_p5 = scmp.lt.s32.totalorder %s2557_s18, %s2557_s18 }
   0xc   :  { %p2564_p6 = por %p2563_p5, %p2562_p4 }
   0xe   :  { %p2565_p7 = pnand %p2564_p6, %p2558_p3 }
  0x10   :  { %2568 = shalt.err (!%p2565_p7)
}
  0x11   :  { %s2620_s19 = smov 256   ;;  %s2621_s20 = smov 16  }
  0x12   :  { %21 = dma.hbm_to_vmem [thread:$0]  %s3243_s0, 4096, %s16_s10, [#allocation5], %s2620_s19, %s2620_s19, %s2621_s20  }
  0x13   :  { %s2622_s23 = smov [#allocation7]   ;;  %s2569_s27 = scalar_lea.hbm %s3244_s1, 256 }
  0x14   :  { %s28_s24 = sshll.u32 %s2622_s23, 4  ;;  %p2570_p8 = scmp.ne.s32.totalorder %s3244_s1, %s2569_s27  ;;  %s29_s24 = int_to_ptr.vmem [resolvable:$true] %s28_s24 }
  0x15   :  { %p2573_p9 = scmp.lt.u32.totalorder %s2569_s27, %s3244_s1 }
  0x17   :  { %p2575_p10 = pnand %p2573_p9, %p2570_p8 }
  0x19   :  { %2578 = shalt.err (!%p2575_p10)
}
  0x1a   :  { %s2579_s4 = scalar_lea.vmem %s29_s24, 256  ;;  %p2584_p12 = scmp.lt.s32.totalorder %s29_s24, %s29_s24 }
  0x1b   :  { %p2580_p11 = scmp.ne.s32.totalorder %s29_s24, %s2579_s4  ;;  %p2585_p13 = scmp.lt.s32.totalorder %s2579_s4, %s2579_s4 }
  0x1d   :  { %p2586_p0 = por %p2585_p13, %p2584_p12 }
  0x1f   :  { %p2587_p1 = pnand %p2586_p0, %p2580_p11 }
  0x21   :  { %2590 = shalt.err (!%p2587_p1)
}
  0x22   :  { %31 = dma.hbm_to_vmem [thread:$0]  %s3244_s1, 256, %s29_s24, [#allocation8]  }
  0x23   :  { %2613 = dma.done.wait [#allocation5], 4096  }
  0x24   :  { %2614 = vsyncadd [#allocation5], 4294963200 }
  0x25   :  { %2615 = dma.done.wait [#allocation8], 256  }
  0x26   :  { %2616 = vsyncadd [#allocation8], 4294967040  ;;  %v44_v0 = vld [vmem:[#allocation4 + $0x8] sm:$0xff]  ;;  %v46_v1 = vld [vmem:[#allocation4 + $0x18] sm:$0xff]  ;;  %v2623_v55 = vmov 0.0   ;;  %v107_v56 = vlaneseq  ;;  %s2626_s1 = smov [#allocation9]  }
  0x27   :  { %v43_v2 = vld [vmem:[#allocation4] sm:$0xff]  ;;  %v2666_v3 = vpack.c.bf16 %v46_v1, %v44_v0  ;;  %v45_v4 = vld [vmem:[#allocation4 + $0x10] sm:$0xff]  ;;  %v48_v5 = vld [vmem:[#allocation4 + $0x28] sm:$0xff]  ;;  %299 = vmatprep.mubr.f32.mxu1 %v2623_v55  ;;  %v2624_v62 = vmov 1e+30   ;;  %s2171_s6 = sshll.u32 %s2626_s1, 4  ;;  %s2172_s6 = int_to_ptr.vmem [resolvable:$true] %s2171_s6 }
  0x28   :  { %v50_v6 = vld [vmem:[#allocation4 + $0x38] sm:$0xff]  ;;  %v2668_v7 = vpack.c.bf16 %v45_v4, %v43_v2  ;;  %v47_v9 = vld [vmem:[#allocation4 + $0x20] sm:$0xff]  ;;  %v49_v10 = vld [vmem:[#allocation4 + $0x30] sm:$0xff]  ;;  %v2762_v57 = vshrl.u32 %v107_v56, 7  ;;  %s2591_s7 = scalar_lea.vmem %s2172_s6, 16  ;;  %s2595_s8 = scalar_lea.vmem %s2172_s6, 32 }
  0x29   :  { %v2670_v8 = vpack.c.bf16 %v50_v6, %v48_v5  ;;  %166 = vmatprep.subr.bf16.mxu0 %v2666_v3  ;;  %2202 = vmatprep.subr.bf16.mxu1 %v2666_v3  ;;  %v52_v11 = vld [vmem:[#allocation4 + $0x48] sm:$0xff]  ;;  %v54_v12 = vld [vmem:[#allocation4 + $0x58] sm:$0xff]  ;;  %v2678_v13 = vpack.c.bf16 %v49_v10, %v47_v9  ;;  %v51_v15 = vld [vmem:[#allocation4 + $0x40] sm:$0xff]  ;;  %p2592_p2 = scmp.ne.s32.totalorder %s2172_s6, %s2591_s7  ;;  %p2596_p3 = scmp.lt.s32.totalorder %s2172_s6, %s2172_s6 }
  0x2a   :  { %167 = vmatpush1.bf16.xpose.msra.mxu0 %v2668_v7  ;;  %2204 = vmatpush1.bf16.msra.mxu1 %v2668_v7  ;;  %v2680_v14 = vpack.c.bf16 %v54_v12, %v52_v11  ;;  %v53_v16 = vld [vmem:[#allocation4 + $0x50] sm:$0xff]  ;;  %v56_v17 = vld [vmem:[#allocation4 + $0x68] sm:$0xff]  ;;  %v58_v18 = vld [vmem:[#allocation4 + $0x78] sm:$0xff]  ;;  %vm109_vm0 = vcmp.lt.s32.totalorder %v2762_v57, 2  ;;  %p2597_p4 = scmp.lt.s32.totalorder %s2595_s8, %s2591_s7 }
  0x2b   :  { %168 = vmatprep.subr.bf16.mxu0 %v2670_v8  ;;  %2206 = vmatprep.subr.bf16.mxu1 %v2670_v8  ;;  %v2684_v19 = vpack.c.bf16 %v53_v16, %v51_v15  ;;  %v2686_v20 = vld [vmem:[#allocation7 + $0x8] sm:$0xff]  ;;  %v55_v21 = vld [vmem:[#allocation4 + $0x60] sm:$0xff]  ;;  %v57_v22 = vld [vmem:[#allocation4 + $0x70] sm:$0xff]  ;;  %v2695_v26 = vpack.c.bf16 %v58_v18, %v56_v17  ;;  %v2765_v63 = vsel %vm109_vm0, 0.0, %v2624_v62 }
  0x2c   :  { %v165_v23 = vpack.c.bf16 %v2686_v20, %v2686_v20  ;;  %v2690_v24 = vld [vmem:[#allocation7] sm:$0xff]  ;;  %v207_v25 = vmul.f32 %v2686_v20, %v2686_v20  ;;  %v60_v27 = vld [vmem:[#allocation4 + $0x88] sm:$0xff]  ;;  %v62_v28 = vld [vmem:[#allocation4 + $0x98] sm:$0xff]  ;;  %v2701_v30 = vpack.c.bf16 %v57_v22, %v55_v21  ;;  %v2769_v21 = vand.u32 127, %v107_v56  ;;  %p2598_p5 = por %p2597_p4, %p2596_p3 }
  0x2d   :  { %v206_v29 = vmul.f32 %v2690_v24, %v2690_v24  ;;  %v2704_v32 = vpack.c.bf16 %v62_v28, %v60_v27  ;;  %v59_v33 = vld [vmem:[#allocation4 + $0x80] sm:$0xff]  ;;  %v61_v34 = vld [vmem:[#allocation4 + $0x90] sm:$0xff]  ;;  %v64_v35 = vld [vmem:[#allocation4 + $0xa8] sm:$0xff]  ;;  %v164_v54 = vpack.c.bf16 %v2690_v24, %v2690_v24  ;;  %v2625_v27 = vmov 1.0  }
  0x2e   :  { %2208 = vmatpush1.bf16.msra.mxu1 %v2678_v13  ;;  %198 = vmatprep.mubr.bf16.mxu0 %v165_v23  ;;  %v66_v36 = vld [vmem:[#allocation4 + $0xb8] sm:$0xff]  ;;  %v2708_v37 = vpack.c.bf16 %v61_v34, %v59_v33  ;;  %v63_v39 = vld [vmem:[#allocation4 + $0xa0] sm:$0xff]  ;;  %v65_v40 = vld [vmem:[#allocation4 + $0xb0] sm:$0xff]  ;;  %vm113_vm4 = vcmp.lt.s32.totalorder %v2769_v21, 64  ;;  %p2599_p6 = pnand %p2598_p5, %p2592_p2 }
  0x2f   :  { %2210 = vmatprep.subr.bf16.mxu1 %v2680_v14  ;;  %v208_v31 = vadd.f32 %v207_v25, %v206_v29  ;;  %v2710_v38 = vpack.c.bf16 %v66_v36, %v64_v35  ;;  %v68_v41 = vld [vmem:[#allocation4 + $0xc8] sm:$0xff]  ;;  %v70_v42 = vld [vmem:[#allocation4 + $0xd8] sm:$0xff]  ;;  %v2716_v43 = vpack.c.bf16 %v65_v40, %v63_v39  ;;  %v67_v45 = vld [vmem:[#allocation4 + $0xc0] sm:$0xff] }
  0x30   :  { %v2718_v44 = vpack.c.bf16 %v70_v42, %v68_v41  ;;  %v69_v46 = vld [vmem:[#allocation4 + $0xd0] sm:$0xff]  ;;  %v72_v47 = vld [vmem:[#allocation4 + $0xe8] sm:$0xff]  ;;  %v74_v48 = vld [vmem:[#allocation4 + $0xf8] sm:$0xff] }
  0x31   :  { %209 = vadd.xlane.f32.xlu0 %v208_v31  ;;  %v2722_v49 = vpack.c.bf16 %v69_v46, %v67_v45  ;;  %v2724_v50 = vpack.c.bf16 %v74_v48, %v72_v47  ;;  %v71_v51 = vld [vmem:[#allocation4 + $0xe0] sm:$0xff]  ;;  %v73_v52 = vld [vmem:[#allocation4 + $0xf0] sm:$0xff] }
  0x32   :  { %169 = vmatpush1.bf16.xpose.msra.mxu0 %v2678_v13  ;;  %2212 = vmatpush1.bf16.msra.mxu1 %v2684_v19  ;;  %v2730_v53 = vpack.c.bf16 %v73_v52, %v71_v51 }
  0x33   :  { %170 = vmatprep.subr.bf16.mxu0 %v2680_v14  ;;  %2214 = vmatprep.subr.bf16.mxu1 %v2695_v26 }
  0x36   :  { %2216 = vmatpush1.bf16.msra.mxu1 %v2701_v30 }
  0x37   :  { %2218 = vmatprep.subr.bf16.mxu1 %v2704_v32 }
  0x3a   :  { %171 = vmatpush1.bf16.xpose.msra.mxu0 %v2684_v19  ;;  %2220 = vmatpush1.bf16.msra.mxu1 %v2708_v37 }
  0x3b   :  { %172 = vmatprep.subr.bf16.mxu0 %v2695_v26  ;;  %2222 = vmatprep.subr.bf16.mxu1 %v2710_v38 }
  0x3e   :  { %2224 = vmatpush1.bf16.msra.mxu1 %v2716_v43 }
  0x3f   :  { %2226 = vmatprep.subr.bf16.mxu1 %v2718_v44 }
  0x42   :  { %173 = vmatpush1.bf16.xpose.msra.mxu0 %v2701_v30  ;;  %2228 = vmatpush1.bf16.msra.mxu1 %v2722_v49 }
  0x43   :  { %174 = vmatprep.subr.bf16.mxu0 %v2704_v32  ;;  %2230 = vmatprep.subr.bf16.mxu1 %v2724_v50 }
  0x46   :  { %2232 = vmatpush1.bf16.msra.mxu1 %v2730_v53 }
  0x47   :  { %371 = vmatprep.subr.bf16.mxu1 %v2666_v3 }
  0x4a   :  { %175 = vmatpush1.bf16.xpose.msra.mxu0 %v2708_v37 }
  0x4b   :  { %176 = vmatprep.subr.bf16.mxu0 %v2710_v38 }
  0x52   :  { %177 = vmatpush1.bf16.xpose.msra.mxu0 %v2716_v43 }
  0x53   :  { %178 = vmatprep.subr.bf16.mxu0 %v2718_v44 }
  0x5a   :  { %179 = vmatpush1.bf16.xpose.msra.mxu0 %v2722_v49 }
  0x5b   :  { %180 = vmatprep.subr.bf16.mxu0 %v2724_v50 }
  0x62   :  { %181 = vmatpush1.bf16.xpose.msra.mxu0 %v2730_v53 }
  0x63   :  { %2234 = vmatprep.subr.bf16.mxu0 %v2666_v3 }
  0x69   :  { %199 = vmatmul.mubr.bf16.vlgmr.msra.gmra.mrb[0].mxu0 %v164_v54 }
  0x6a   :  { %2236 = vmatpush1.bf16.msra.mxu0 %v2668_v7  ;;  %504 = vmatprep.mubr.f32.mxu0 %v2623_v55 }
  0x6b   :  { %2238 = vmatprep.subr.bf16.mxu0 %v2670_v8 }
  0x6e   :  { %2240 = vmatpush1.bf16.msra.mxu0 %v2678_v13 }
  0x6f   :  { %2242 = vmatprep.subr.bf16.mxu0 %v2680_v14 }
  0x72   :  { %2244 = vmatpush1.bf16.msra.mxu0 %v2684_v19 }
  0x73   :  { %2246 = vmatprep.subr.bf16.mxu0 %v2695_v26 }
  0x76   :  { %2248 = vmatpush1.bf16.msra.mxu0 %v2701_v30 }
  0x77   :  { %2250 = vmatprep.subr.bf16.mxu0 %v2704_v32 }
  0x7a   :  { %2252 = vmatpush1.bf16.msra.mxu0 %v2708_v37 }
  0x7b   :  { %2254 = vmatprep.subr.bf16.mxu0 %v2710_v38 }
  0x7e   :  { %2256 = vmatpush1.bf16.msra.mxu0 %v2716_v43 }
  0x7f   :  { %2258 = vmatprep.subr.bf16.mxu0 %v2718_v44 }
  0x82   :  { %2260 = vmatpush1.bf16.msra.mxu0 %v2722_v49 }
  0x83   :  { %2262 = vmatprep.subr.bf16.mxu0 %v2724_v50 }
  0x86   :  { %2264 = vmatpush1.bf16.msra.mxu0 %v2730_v53 }
  0x87   :  { %576 = vmatprep.subr.bf16.mxu0 %v2666_v3 }
  0xbe   :  { %v210_v59 = vpop.xlane.xlu0 %209 }
 0x13c   :  { %v200_v58 = vpop.f32.mrb[0].mxu0 }
 0x13d   :  { %v211_v60 = vmul.f32 2.0, %v200_v58  ;;  %v202_v61 = vpop.f32.mrb[1].mxu0 }
 0x13e   :  { %v203_v0 = vpop.f32.mrb[2].mxu0 }
 0x13f   :  { %v212_v1 = vsub.f32 %v210_v59, %v211_v60  ;;  %v204_v2 = vpop.f32.mrb[3].mxu0 }
 0x141   :  { %v213_v4 = vadd.f32 %v212_v1, %v2765_v63 }
 0x143   :  { %v214_v5 = vrot.slane %v213_v4, 4 }
 0x145   :  { %v215_v6 = vmin.f32 %v213_v4, %v214_v5 }
 0x147   :  { %v216_v9 = vrot.slane %v215_v6, 2 }
 0x149   :  { %v217_v10 = vmin.f32 %v215_v6, %v216_v9 }
 0x14b   :  { %v218_v11 = vrot.slane %v217_v10, 1 }
 0x14d   :  { %v219_v12 = vmin.f32 %v217_v10, %v218_v11 }
 0x14f   :  { %vm220_vm1 = vcmp.le.f32.partialorder %v213_v4, %v219_v12 }
 0x150   :  { %v221_v15 = vsel %vm220_vm1, %v2762_v57, 8 }
 0x151   :  { %v222_v16 = vrot.slane %v221_v15, 4 }
 0x153   :  { %vm223_vm2 = vcmp.lt.s32.totalorder %v221_v15, %v222_v16 }
 0x154   :  { %v224_v17 = vsel %vm223_vm2, %v221_v15, %v222_v16 }
 0x155   :  { %v225_v18 = vrot.slane %v224_v17, 2 }
 0x157   :  { %vm226_vm3 = vcmp.lt.s32.totalorder %v224_v17, %v225_v18 }
 0x158   :  { %v227_v22 = vsel %vm226_vm3, %v224_v17, %v225_v18 }
 0x159   :  { %v228_v23 = vrot.slane %v227_v22, 1 }
 0x15b   :  { %vm229_vm5 = vcmp.lt.s32.totalorder %v227_v22, %v228_v23 }
 0x15c   :  { %v230_v25 = vsel %vm229_vm5, %v227_v22, %v228_v23 }
 0x15d   :  { %vm231_vm6 = vcmp.eq.s32.totalorder %v230_v25, %v2762_v57 }
 0x15e   :  { %vm232_vm7 = vmand %vm231_vm6, %vm113_vm4 }
 0x15f   :  { %2182 = vmatmul.mubr.msk.f32.vlgmr.msra.gmra.mrb[0].mxu1 %vm232_vm7, %v2625_v27  ;;  %v2181_v28 = vsel %vm232_vm7, 1.0, %v2623_v55 }
 0x160   :  { %306 = vadd.xlane.f32.xlu0 %v2181_v28  ;;  %372 = vmatpush1.bf16.xpose.msra.mxu1 %v2668_v7 }
 0x161   :  { %373 = vmatprep.subr.bf16.mxu1 %v2670_v8 }
 0x168   :  { %374 = vmatpush1.bf16.xpose.msra.mxu1 %v2678_v13 }
 0x169   :  { %375 = vmatprep.subr.bf16.mxu1 %v2680_v14 }
 0x170   :  { %376 = vmatpush1.bf16.xpose.msra.mxu1 %v2684_v19 }
 0x171   :  { %377 = vmatprep.subr.bf16.mxu1 %v2695_v26 }
 0x178   :  { %378 = vmatpush1.bf16.xpose.msra.mxu1 %v2701_v30 }
 0x179   :  { %379 = vmatprep.subr.bf16.mxu1 %v2704_v32 }
 0x180   :  { %380 = vmatpush1.bf16.xpose.msra.mxu1 %v2708_v37 }
 0x181   :  { %381 = vmatprep.subr.bf16.mxu1 %v2710_v38 }
 0x188   :  { %382 = vmatpush1.bf16.xpose.msra.mxu1 %v2716_v43 }
 0x189   :  { %383 = vmatprep.subr.bf16.mxu1 %v2718_v44 }
 0x190   :  { %384 = vmatpush1.bf16.xpose.msra.mxu1 %v2722_v49 }
 0x191   :  { %385 = vmatprep.subr.bf16.mxu1 %v2724_v50 }
 0x198   :  { %386 = vmatpush1.bf16.xpose.msra.mxu1 %v2730_v53 }
 0x199   :  { %2266 = vmatprep.subr.bf16.mxu1 %v2666_v3 }
 0x1ed   :  { %v307_v29 = vpop.xlane.xlu0 %306 }
 0x1ee   :  { %v308_v31 = vmax.f32 %v307_v29, 1.0  ;;  %vm310_vm8 = vcmp.gt.f32.partialorder %v307_v29, 0.0 }
 0x1f0   :  { %2529 = vrcp.f32 %v308_v31 }
 0x1fa   :  { %v2530_v33 = vpop.eup %2529 }
 0x232   :  { %v301_v34 = vpop.f32.mrb[0].mxu1 }
 0x233   :  { %v311_v35 = vmul.f32 %v2530_v33, %v301_v34  ;;  %v303_v36 = vpop.f32.mrb[1].mxu1 }
 0x234   :  { %v312_v39 = vmul.f32 %v2530_v33, %v303_v36 }
 0x235   :  { %v2794_v40 = vsel %vm310_vm8, %v311_v35, %v2690_v24 }
 0x236   :  { %v2797_v41 = vsel %vm310_vm8, %v312_v39, %v2686_v20  ;;  %v411_v42 = vmul.f32 %v2794_v40, %v2794_v40  ;;  %v369_v47 = vpack.c.bf16 %v2794_v40, %v2794_v40 }
 0x237   :  { %v370_v45 = vpack.c.bf16 %v2797_v41, %v2797_v41  ;;  %v412_v46 = vmul.f32 %v2797_v41, %v2797_v41 }
 0x239   :  { %403 = vmatprep.mubr.bf16.mxu1 %v370_v45  ;;  %v413_v48 = vadd.f32 %v412_v46, %v411_v42 }
 0x23a   :  { %404 = vmatmul.mubr.bf16.vlgmr.msra.gmra.mrb[4].mxu1 %v369_v47 }
 0x23b   :  { %414 = vadd.xlane.f32.xlu1 %v413_v48  ;;  %2268 = vmatpush1.bf16.msra.mxu1 %v2668_v7 }
 0x23c   :  { %2270 = vmatprep.subr.bf16.mxu1 %v2670_v8  ;;  %709 = vmatprep.mubr.f32.mxu1 %v2623_v55 }
 0x23f   :  { %2272 = vmatpush1.bf16.msra.mxu1 %v2678_v13 }
 0x240   :  { %2274 = vmatprep.subr.bf16.mxu1 %v2680_v14 }
 0x243   :  { %2276 = vmatpush1.bf16.msra.mxu1 %v2684_v19 }
 0x244   :  { %2278 = vmatprep.subr.bf16.mxu1 %v2695_v26 }
 0x247   :  { %2280 = vmatpush1.bf16.msra.mxu1 %v2701_v30 }
 0x248   :  { %2282 = vmatprep.subr.bf16.mxu1 %v2704_v32 }
 0x24b   :  { %2284 = vmatpush1.bf16.msra.mxu1 %v2708_v37 }
 0x24c   :  { %2286 = vmatprep.subr.bf16.mxu1 %v2710_v38 }
 0x24f   :  { %2288 = vmatpush1.bf16.msra.mxu1 %v2716_v43 }
 0x250   :  { %2290 = vmatprep.subr.bf16.mxu1 %v2718_v44 }
 0x253   :  { %2292 = vmatpush1.bf16.msra.mxu1 %v2722_v49 }
 0x254   :  { %2294 = vmatprep.subr.bf16.mxu1 %v2724_v50 }
 0x257   :  { %2296 = vmatpush1.bf16.msra.mxu1 %v2730_v53 }
 0x258   :  { %781 = vmatprep.subr.bf16.mxu1 %v2666_v3 }
 0x2c8   :  { %v415_v52 = vpop.xlane.xlu1 %414 }
 0x30d   :  { %v405_v20 = vpop.f32.mrb[4].mxu1 }
 0x30e   :  { %v416_v24 = vmul.f32 2.0, %v405_v20  ;;  %v407_v51 = vpop.f32.mrb[5].mxu1 }
 0x30f   :  { %v408_v54 = vpop.f32.mrb[6].mxu1 }
 0x310   :  { %v417_v56 = vsub.f32 %v415_v52, %v416_v24  ;;  %v409_v58 = vpop.f32.mrb[7].mxu1 }
 0x312   :  { %v418_v59 = vadd.f32 %v417_v56, %v2765_v63 }
 0x314   :  { %v419_v60 = vrot.slane %v418_v59, 4 }
 0x316   :  { %v420_v61 = vmin.f32 %v418_v59, %v419_v60 }
 0x318   :  { %v421_v62 = vrot.slane %v420_v61, 2 }
 0x31a   :  { %v422_v0 = vmin.f32 %v420_v61, %v421_v62 }
 0x31c   :  { %v423_v1 = vrot.slane %v422_v0, 1 }
 0x31e   :  { %v424_v2 = vmin.f32 %v422_v0, %v423_v1 }
 0x320   :  { %vm425_vm9 = vcmp.le.f32.partialorder %v418_v59, %v424_v2 }
 0x321   :  { %v426_v4 = vsel %vm425_vm9, %v2762_v57, 8 }
 0x322   :  { %v427_v5 = vrot.slane %v426_v4, 4 }
 0x324   :  { %vm428_vm10 = vcmp.lt.s32.totalorder %v426_v4, %v427_v5 }
 0x325   :  { %v429_v6 = vsel %vm428_vm10, %v426_v4, %v427_v5 }
 0x326   :  { %v430_v9 = vrot.slane %v429_v6, 2 }
 0x328   :  { %vm431_vm11 = vcmp.lt.s32.totalorder %v429_v6, %v430_v9 }
 0x329   :  { %v432_v10 = vsel %vm431_vm11, %v429_v6, %v430_v9 }
 0x32a   :  { %v433_v11 = vrot.slane %v432_v10, 1 }
 0x32c   :  { %vm434_vm12 = vcmp.lt.s32.totalorder %v432_v10, %v433_v11 }
 0x32d   :  { %v435_v12 = vsel %vm434_vm12, %v432_v10, %v433_v11 }
 0x32e   :  { %vm436_vm13 = vcmp.eq.s32.totalorder %v435_v12, %v2762_v57 }
 0x32f   :  { %vm437_vm14 = vmand %vm436_vm13, %vm113_vm4 }
 0x330   :  { %2184 = vmatmul.mubr.msk.f32.vlgmr.msra.gmra.mrb[4].mxu0 %vm437_vm14, %v2625_v27  ;;  %v2183_v15 = vsel %vm437_vm14, 1.0, %v2623_v55 }
 0x331   :  { %511 = vadd.xlane.f32.xlu1 %v2183_v15  ;;  %577 = vmatpush1.bf16.xpose.msra.mxu0 %v2668_v7 }
 0x332   :  { %578 = vmatprep.subr.bf16.mxu0 %v2670_v8 }
 0x339   :  { %579 = vmatpush1.bf16.xpose.msra.mxu0 %v2678_v13 }
 0x33a   :  { %580 = vmatprep.subr.bf16.mxu0 %v2680_v14 }
 0x341   :  { %581 = vmatpush1.bf16.xpose.msra.mxu0 %v2684_v19 }
 0x342   :  { %582 = vmatprep.subr.bf16.mxu0 %v2695_v26 }
 0x349   :  { %583 = vmatpush1.bf16.xpose.msra.mxu0 %v2701_v30 }
 0x34a   :  { %584 = vmatprep.subr.bf16.mxu0 %v2704_v32 }
 0x351   :  { %585 = vmatpush1.bf16.xpose.msra.mxu0 %v2708_v37 }
 0x352   :  { %586 = vmatprep.subr.bf16.mxu0 %v2710_v38 }
 0x359   :  { %587 = vmatpush1.bf16.xpose.msra.mxu0 %v2716_v43 }
 0x35a   :  { %588 = vmatprep.subr.bf16.mxu0 %v2718_v44 }
 0x361   :  { %589 = vmatpush1.bf16.xpose.msra.mxu0 %v2722_v49 }
 0x362   :  { %590 = vmatprep.subr.bf16.mxu0 %v2724_v50 }
 0x369   :  { %591 = vmatpush1.bf16.xpose.msra.mxu0 %v2730_v53 }
 0x36a   :  { %2298 = vmatprep.subr.bf16.mxu0 %v2666_v3 }
 0x3be   :  { %v512_v16 = vpop.xlane.xlu1 %511 }
 0x3bf   :  { %v513_v17 = vmax.f32 %v512_v16, 1.0  ;;  %vm515_vm15 = vcmp.gt.f32.partialorder %v512_v16, 0.0 }
 0x3c1   :  { %2531 = vrcp.f32 %v513_v17 }
 0x3cb   :  { %v2532_v18 = vpop.eup %2531 }
 0x403   :  { %v506_v22 = vpop.f32.mrb[4].mxu0 }
 0x404   :  { %v516_v23 = vmul.f32 %v2532_v18, %v506_v22  ;;  %v508_v25 = vpop.f32.mrb[5].mxu0 }
 0x405   :  { %v517_v28 = vmul.f32 %v2532_v18, %v508_v25 }
 0x406   :  { %v2848_v29 = vsel %vm515_vm15, %v516_v23, %v2794_v40 }
 0x407   :  { %v2851_v31 = vsel %vm515_vm15, %v517_v28, %v2797_v41  ;;  %v616_v33 = vmul.f32 %v2848_v29, %v2848_v29  ;;  %v574_v36 = vpack.c.bf16 %v2848_v29, %v2848_v29 }
 0x408   :  { %v575_v34 = vpack.c.bf16 %v2851_v31, %v2851_v31  ;;  %v617_v35 = vmul.f32 %v2851_v31, %v2851_v31 }
 0x40a   :  { %608 = vmatprep.mubr.bf16.mxu0 %v575_v34  ;;  %v618_v39 = vadd.f32 %v617_v35, %v616_v33 }
 0x40b   :  { %609 = vmatmul.mubr.bf16.vlgmr.msra.gmra.mrb[8].mxu0 %v574_v36 }
 0x40c   :  { %619 = vadd.xlane.f32.xlu0 %v618_v39  ;;  %2300 = vmatpush1.bf16.msra.mxu0 %v2668_v7 }
 0x40d   :  { %2302 = vmatprep.subr.bf16.mxu0 %v2670_v8  ;;  %914 = vmatprep.mubr.f32.mxu0 %v2623_v55 }
 0x410   :  { %2304 = vmatpush1.bf16.msra.mxu0 %v2678_v13 }
 0x411   :  { %2306 = vmatprep.subr.bf16.mxu0 %v2680_v14 }
 0x414   :  { %2308 = vmatpush1.bf16.msra.mxu0 %v2684_v19 }
 0x415   :  { %2310 = vmatprep.subr.bf16.mxu0 %v2695_v26 }
 0x418   :  { %2312 = vmatpush1.bf16.msra.mxu0 %v2701_v30 }
 0x419   :  { %2314 = vmatprep.subr.bf16.mxu0 %v2704_v32 }
 0x41c   :  { %2316 = vmatpush1.bf16.msra.mxu0 %v2708_v37 }
 0x41d   :  { %2318 = vmatprep.subr.bf16.mxu0 %v2710_v38 }
 0x420   :  { %2320 = vmatpush1.bf16.msra.mxu0 %v2716_v43 }
 0x421   :  { %2322 = vmatprep.subr.bf16.mxu0 %v2718_v44 }
 0x424   :  { %2324 = vmatpush1.bf16.msra.mxu0 %v2722_v49 }
 0x425   :  { %2326 = vmatprep.subr.bf16.mxu0 %v2724_v50 }
 0x428   :  { %2328 = vmatpush1.bf16.msra.mxu0 %v2730_v53 }
 0x429   :  { %986 = vmatprep.subr.bf16.mxu0 %v2666_v3 }
 0x499   :  { %v620_v45 = vpop.xlane.xlu0 %619 }
 0x4de   :  { %v610_v40 = vpop.f32.mrb[8].mxu0 }
 0x4df   :  { %v621_v41 = vmul.f32 2.0, %v610_v40  ;;  %v612_v42 = vpop.f32.mrb[9].mxu0 }
 0x4e0   :  { %v613_v46 = vpop.f32.mrb[10].mxu0 }
 0x4e1   :  { %v622_v47 = vsub.f32 %v620_v45, %v621_v41  ;;  %v614_v48 = vpop.f32.mrb[11].mxu0 }
 0x4e3   :  { %v623_v20 = vadd.f32 %v622_v47, %v2765_v63 }
 0x4e5   :  { %v624_v24 = vrot.slane %v623_v20, 4 }
 0x4e7   :  { %v625_v51 = vmin.f32 %v623_v20, %v624_v24 }
 0x4e9   :  { %v626_v52 = vrot.slane %v625_v51, 2 }
 0x4eb   :  { %v627_v54 = vmin.f32 %v625_v51, %v626_v52 }
 0x4ed   :  { %v628_v56 = vrot.slane %v627_v54, 1 }
 0x4ef   :  { %v629_v58 = vmin.f32 %v627_v54, %v628_v56 }
 0x4f1   :  { %vm630_vm0 = vcmp.le.f32.partialorder %v623_v20, %v629_v58 }
 0x4f2   :  { %v631_v59 = vsel %vm630_vm0, %v2762_v57, 8 }
 0x4f3   :  { %v632_v60 = vrot.slane %v631_v59, 4 }
 0x4f5   :  { %vm633_vm1 = vcmp.lt.s32.totalorder %v631_v59, %v632_v60 }
 0x4f6   :  { %v634_v61 = vsel %vm633_vm1, %v631_v59, %v632_v60 }
 0x4f7   :  { %v635_v62 = vrot.slane %v634_v61, 2 }
 0x4f9   :  { %vm636_vm2 = vcmp.lt.s32.totalorder %v634_v61, %v635_v62 }
 0x4fa   :  { %v637_v0 = vsel %vm636_vm2, %v634_v61, %v635_v62 }
 0x4fb   :  { %v638_v1 = vrot.slane %v637_v0, 1 }
 0x4fd   :  { %vm639_vm3 = vcmp.lt.s32.totalorder %v637_v0, %v638_v1 }
 0x4fe   :  { %v640_v2 = vsel %vm639_vm3, %v637_v0, %v638_v1 }
 0x4ff   :  { %vm641_vm5 = vcmp.eq.s32.totalorder %v640_v2, %v2762_v57 }
 0x500   :  { %vm642_vm6 = vmand %vm641_vm5, %vm113_vm4 }
 0x501   :  { %2186 = vmatmul.mubr.msk.f32.vlgmr.msra.gmra.mrb[2].mxu1 %vm642_vm6, %v2625_v27  ;;  %v2185_v4 = vsel %vm642_vm6, 1.0, %v2623_v55 }
 0x502   :  { %716 = vadd.xlane.f32.xlu1 %v2185_v4  ;;  %782 = vmatpush1.bf16.xpose.msra.mxu1 %v2668_v7 }
 0x503   :  { %783 = vmatprep.subr.bf16.mxu1 %v2670_v8 }
 0x50a   :  { %784 = vmatpush1.bf16.xpose.msra.mxu1 %v2678_v13 }
 0x50b   :  { %785 = vmatprep.subr.bf16.mxu1 %v2680_v14 }
 0x512   :  { %786 = vmatpush1.bf16.xpose.msra.mxu1 %v2684_v19 }
 0x513   :  { %787 = vmatprep.subr.bf16.mxu1 %v2695_v26 }
 0x51a   :  { %788 = vmatpush1.bf16.xpose.msra.mxu1 %v2701_v30 }
 0x51b   :  { %789 = vmatprep.subr.bf16.mxu1 %v2704_v32 }
 0x522   :  { %790 = vmatpush1.bf16.xpose.msra.mxu1 %v2708_v37 }
 0x523   :  { %791 = vmatprep.subr.bf16.mxu1 %v2710_v38 }
 0x52a   :  { %792 = vmatpush1.bf16.xpose.msra.mxu1 %v2716_v43 }
 0x52b   :  { %793 = vmatprep.subr.bf16.mxu1 %v2718_v44 }
 0x532   :  { %794 = vmatpush1.bf16.xpose.msra.mxu1 %v2722_v49 }
 0x533   :  { %795 = vmatprep.subr.bf16.mxu1 %v2724_v50 }
 0x53a   :  { %796 = vmatpush1.bf16.xpose.msra.mxu1 %v2730_v53 }
 0x58f   :  { %v717_v5 = vpop.xlane.xlu1 %716 }
 0x590   :  { %v718_v6 = vmax.f32 %v717_v5, 1.0  ;;  %vm720_vm7 = vcmp.gt.f32.partialorder %v717_v5, 0.0 }
 0x592   :  { %2533 = vrcp.f32 %v718_v6 }
 0x59c   :  { %v2534_v9 = vpop.eup %2533 }
 0x5d4   :  { %v711_v10 = vpop.f32.mrb[2].mxu1 }
 0x5d5   :  { %v721_v11 = vmul.f32 %v2534_v9, %v711_v10  ;;  %v713_v12 = vpop.f32.mrb[3].mxu1 }
 0x5d6   :  { %v722_v15 = vmul.f32 %v2534_v9, %v713_v12 }
 0x5d7   :  { %v2901_v16 = vsel %vm720_vm7, %v721_v11, %v2848_v29 }
 0x5d8   :  { %v2904_v17 = vsel %vm720_vm7, %v722_v15, %v2851_v31  ;;  %v821_v18 = vmul.f32 %v2901_v16, %v2901_v16  ;;  %v779_v25 = vpack.c.bf16 %v2901_v16, %v2901_v16 }
 0x5d9   :  { %v780_v22 = vpack.c.bf16 %v2904_v17, %v2904_v17  ;;  %v822_v23 = vmul.f32 %v2904_v17, %v2904_v17 }
 0x5db   :  { %813 = vmatprep.mubr.bf16.mxu1 %v780_v22  ;;  %v823_v28 = vadd.f32 %v822_v23, %v821_v18  ;;  %v934_v22 = vld [vmem:[#allocation4] sm:$0xff]  ;;  %v936_v23 = vld [vmem:[#allocation4 + $0x10] sm:$0xff] }
 0x5dc   :  { %814 = vmatmul.mubr.bf16.vlgmr.msra.gmra.mrb[8].mxu1 %v779_v25  ;;  %v2954_v25 = vpack.c.bf16 %v936_v23, %v934_v22 }
 0x5dd   :  { %824 = vadd.xlane.f32.xlu0 %v823_v28  ;;  %1119 = vmatprep.mubr.f32.mxu1 %v2623_v55  ;;  %v939_v28 = vld [vmem:[#allocation4 + $0x28] sm:$0xff] }
 0x66a   :  { %v825_v34 = vpop.xlane.xlu0 %824 }
 0x6af   :  { %v815_v29 = vpop.f32.mrb[8].mxu1 }
 0x6b0   :  { %v826_v31 = vmul.f32 2.0, %v815_v29  ;;  %v817_v33 = vpop.f32.mrb[9].mxu1  ;;  %v941_v29 = vld [vmem:[#allocation4 + $0x38] sm:$0xff] }
 0x6b1   :  { %v818_v35 = vpop.f32.mrb[10].mxu1  ;;  %v938_v33 = vld [vmem:[#allocation4 + $0x20] sm:$0xff] }
 0x6b2   :  { %v827_v36 = vsub.f32 %v825_v34, %v826_v31  ;;  %v819_v39 = vpop.f32.mrb[11].mxu1  ;;  %v2960_v31 = vpack.c.bf16 %v941_v29, %v939_v28  ;;  %v940_v34 = vld [vmem:[#allocation4 + $0x30] sm:$0xff]  ;;  %v962_v28 = vld [vmem:[#allocation4 + $0xe0] sm:$0xff] }
 0x6b3   :  { %v2962_v35 = vpack.c.bf16 %v940_v34, %v938_v33  ;;  %v945_v39 = vld [vmem:[#allocation4 + $0x58] sm:$0xff]  ;;  %v964_v29 = vld [vmem:[#allocation4 + $0xf0] sm:$0xff] }
 0x6b4   :  { %v828_v40 = vadd.f32 %v827_v36, %v2765_v63  ;;  %v943_v36 = vld [vmem:[#allocation4 + $0x48] sm:$0xff]  ;;  %v3009_v33 = vpack.c.bf16 %v964_v29, %v962_v28 }
 0x6b6   :  { %v829_v41 = vrot.slane %v828_v40, 4 }
 0x6b8   :  { %v830_v42 = vmin.f32 %v828_v40, %v829_v41  ;;  %v942_v41 = vld [vmem:[#allocation4 + $0x40] sm:$0xff] }
 0x6ba   :  { %v831_v45 = vrot.slane %v830_v42, 2 }
 0x6bc   :  { %v832_v46 = vmin.f32 %v830_v42, %v831_v45  ;;  %v944_v42 = vld [vmem:[#allocation4 + $0x50] sm:$0xff] }
 0x6bd   :  { %v2970_v45 = vpack.c.bf16 %v944_v42, %v942_v41 }
 0x6be   :  { %v833_v47 = vrot.slane %v832_v46, 1 }
 0x6c0   :  { %v834_v48 = vmin.f32 %v832_v46, %v833_v47  ;;  %v947_v46 = vld [vmem:[#allocation4 + $0x68] sm:$0xff]  ;;  %v949_v47 = vld [vmem:[#allocation4 + $0x78] sm:$0xff] }
 0x6c2   :  { %vm835_vm8 = vcmp.le.f32.partialorder %v828_v40, %v834_v48  ;;  %v2968_v40 = vpack.c.bf16 %v945_v39, %v943_v36  ;;  %v2976_v48 = vpack.c.bf16 %v949_v47, %v947_v46 }
 0x6c3   :  { %v836_v20 = vsel %vm835_vm8, %v2762_v57, 8 }
 0x6c4   :  { %v837_v24 = vrot.slane %v836_v20, 4 }
 0x6c6   :  { %vm838_vm9 = vcmp.lt.s32.totalorder %v836_v20, %v837_v24 }
 0x6c7   :  { %v839_v51 = vsel %vm838_vm9, %v836_v20, %v837_v24  ;;  %v946_v20 = vld [vmem:[#allocation4 + $0x60] sm:$0xff]  ;;  %v948_v24 = vld [vmem:[#allocation4 + $0x70] sm:$0xff] }
 0x6c8   :  { %v840_v52 = vrot.slane %v839_v51, 2 }
 0x6ca   :  { %vm841_vm10 = vcmp.lt.s32.totalorder %v839_v51, %v840_v52 }
 0x6cb   :  { %v842_v54 = vsel %vm841_vm10, %v839_v51, %v840_v52  ;;  %v2978_v51 = vpack.c.bf16 %v948_v24, %v946_v20  ;;  %v951_v52 = vld [vmem:[#allocation4 + $0x88] sm:$0xff] }
 0x6cc   :  { %v843_v56 = vrot.slane %v842_v54, 1 }
 0x6ce   :  { %vm844_vm11 = vcmp.lt.s32.totalorder %v842_v54, %v843_v56 }
 0x6cf   :  { %v845_v58 = vsel %vm844_vm11, %v842_v54, %v843_v56  ;;  %v953_v54 = vld [vmem:[#allocation4 + $0x98] sm:$0xff] }
 0x6d0   :  { %vm846_vm12 = vcmp.eq.s32.totalorder %v845_v58, %v2762_v57  ;;  %v2984_v56 = vpack.c.bf16 %v953_v54, %v951_v52  ;;  %v950_v58 = vld [vmem:[#allocation4 + $0x80] sm:$0xff] }
 0x6d1   :  { %vm847_vm13 = vmand %vm846_vm12, %vm113_vm4 }
 0x6d2   :  { %2188 = vmatmul.mubr.msk.f32.vlgmr.msra.gmra.mrb[6].mxu0 %vm847_vm13, %v2625_v27  ;;  %v2187_v59 = vsel %vm847_vm13, 1.0, %v2623_v55 }
 0x6d3   :  { %921 = vadd.xlane.f32.xlu1 %v2187_v59  ;;  %987 = vmatpush1.bf16.xpose.msra.mxu0 %v2668_v7  ;;  %v952_v59 = vld [vmem:[#allocation4 + $0x90] sm:$0xff] }
 0x6d4   :  { %988 = vmatprep.subr.bf16.mxu0 %v2670_v8 }
 0x6db   :  { %989 = vmatpush1.bf16.xpose.msra.mxu0 %v2678_v13 }
 0x6dc   :  { %990 = vmatprep.subr.bf16.mxu0 %v2680_v14 }
 0x6e3   :  { %991 = vmatpush1.bf16.xpose.msra.mxu0 %v2684_v19 }
 0x6e4   :  { %992 = vmatprep.subr.bf16.mxu0 %v2695_v26 }
 0x6eb   :  { %993 = vmatpush1.bf16.xpose.msra.mxu0 %v2701_v30 }
 0x6ec   :  { %994 = vmatprep.subr.bf16.mxu0 %v2704_v32 }
 0x6f3   :  { %995 = vmatpush1.bf16.xpose.msra.mxu0 %v2708_v37 }
 0x6f4   :  { %996 = vmatprep.subr.bf16.mxu0 %v2710_v38 }
 0x6fb   :  { %997 = vmatpush1.bf16.xpose.msra.mxu0 %v2716_v43 }
 0x6fc   :  { %998 = vmatprep.subr.bf16.mxu0 %v2718_v44 }
 0x703   :  { %999 = vmatpush1.bf16.xpose.msra.mxu0 %v2722_v49 }
 0x704   :  { %1000 = vmatprep.subr.bf16.mxu0 %v2724_v50 }
 0x70b   :  { %1001 = vmatpush1.bf16.xpose.msra.mxu0 %v2730_v53 }
 0x760   :  { %v922_v60 = vpop.xlane.xlu1 %921 }
 0x761   :  { %v923_v61 = vmax.f32 %v922_v60, 1.0  ;;  %vm925_vm14 = vcmp.gt.f32.partialorder %v922_v60, 0.0  ;;  %v2986_v60 = vpack.c.bf16 %v952_v59, %v950_v58 }
 0x763   :  { %2535 = vrcp.f32 %v923_v61  ;;  %v955_v61 = vld [vmem:[#allocation4 + $0xa8] sm:$0xff] }
 0x76d   :  { %v2536_v62 = vpop.eup %2535 }
 0x7a5   :  { %v916_v0 = vpop.f32.mrb[6].mxu0 }
 0x7a6   :  { %v926_v1 = vmul.f32 %v2536_v62, %v916_v0  ;;  %v918_v2 = vpop.f32.mrb[7].mxu0 }
 0x7a7   :  { %v927_v4 = vmul.f32 %v2536_v62, %v918_v2  ;;  %v957_v62 = vld [vmem:[#allocation4 + $0xb8] sm:$0xff]  ;;  %v956_v2 = vld [vmem:[#allocation4 + $0xb0] sm:$0xff] }
 0x7a8   :  { %v2938_v5 = vsel %vm925_vm14, %v926_v1, %v2901_v16  ;;  %v935_v16 = vld [vmem:[#allocation4 + $0x8] sm:$0xff]  ;;  %v2992_v0 = vpack.c.bf16 %v957_v62, %v955_v61  ;;  %v954_v1 = vld [vmem:[#allocation4 + $0xa0] sm:$0xff] }
 0x7a9   :  { %v2941_v6 = vsel %vm925_vm14, %v927_v4, %v2904_v17  ;;  %v1026_v9 = vmul.f32 %v2938_v5, %v2938_v5  ;;  %v984_v12 = vpack.c.bf16 %v2938_v5, %v2938_v5  ;;  %v937_v17 = vld [vmem:[#allocation4 + $0x18] sm:$0xff]  ;;  %v2994_v4 = vpack.c.bf16 %v956_v2, %v954_v1 }
 0x7aa   :  { %v985_v10 = vpack.c.bf16 %v2941_v6, %v2941_v6  ;;  %v1027_v11 = vmul.f32 %v2941_v6, %v2941_v6  ;;  %v2952_v18 = vpack.c.bf16 %v937_v17, %v935_v16  ;;  %v963_v16 = vld [vmem:[#allocation4 + $0xe8] sm:$0xff]  ;;  %v965_v17 = vld [vmem:[#allocation4 + $0xf8] sm:$0xff] }
 0x7ab   :  { %v3004_v23 = vpack.c.bf16 %v965_v17, %v963_v16 }
 0x7ac   :  { %1018 = vmatprep.mubr.bf16.mxu0 %v985_v10  ;;  %v1028_v15 = vadd.f32 %v1027_v11, %v1026_v9  ;;  %2330 = vmatprep.subr.bf16.mxu1 %v2952_v18  ;;  %v959_v9 = vld [vmem:[#allocation4 + $0xc8] sm:$0xff]  ;;  %v961_v10 = vld [vmem:[#allocation4 + $0xd8] sm:$0xff]  ;;  %v958_v11 = vld [vmem:[#allocation4 + $0xc0] sm:$0xff] }
 0x7ad   :  { %1019 = vmatmul.mubr.bf16.vlgmr.msra.gmra.mrb[12].mxu0 %v984_v12  ;;  %2362 = vmatprep.subr.bf16.mxu0 %v2952_v18  ;;  %v2999_v12 = vpack.c.bf16 %v961_v10, %v959_v9 }
 0x7ae   :  { %1029 = vadd.xlane.f32.xlu0 %v1028_v15  ;;  %1324 = vmatprep.mubr.f32.mxu0 %v2623_v55  ;;  %v960_v15 = vld [vmem:[#allocation4 + $0xd0] sm:$0xff] }
 0x7af   :  { %2332 = vmatpush1.bf16.msra.mxu1 %v2954_v25  ;;  %2364 = vmatpush1.bf16.msra.mxu0 %v2954_v25  ;;  %v3002_v22 = vpack.c.bf16 %v960_v15, %v958_v11 }
 0x7b0   :  { %2334 = vmatprep.subr.bf16.mxu1 %v2960_v31  ;;  %2366 = vmatprep.subr.bf16.mxu0 %v2960_v31 }
 0x7b3   :  { %2336 = vmatpush1.bf16.msra.mxu1 %v2962_v35  ;;  %2368 = vmatpush1.bf16.msra.mxu0 %v2962_v35 }
 0x7b4   :  { %2338 = vmatprep.subr.bf16.mxu1 %v2968_v40  ;;  %2370 = vmatprep.subr.bf16.mxu0 %v2968_v40 }
 0x7b7   :  { %2340 = vmatpush1.bf16.msra.mxu1 %v2970_v45  ;;  %2372 = vmatpush1.bf16.msra.mxu0 %v2970_v45 }
 0x7b8   :  { %2342 = vmatprep.subr.bf16.mxu1 %v2976_v48  ;;  %2374 = vmatprep.subr.bf16.mxu0 %v2976_v48 }
 0x7bb   :  { %2344 = vmatpush1.bf16.msra.mxu1 %v2978_v51  ;;  %2376 = vmatpush1.bf16.msra.mxu0 %v2978_v51 }
 0x7bc   :  { %2346 = vmatprep.subr.bf16.mxu1 %v2984_v56  ;;  %2378 = vmatprep.subr.bf16.mxu0 %v2984_v56 }
 0x7bf   :  { %2348 = vmatpush1.bf16.msra.mxu1 %v2986_v60  ;;  %2380 = vmatpush1.bf16.msra.mxu0 %v2986_v60 }
 0x7c0   :  { %2350 = vmatprep.subr.bf16.mxu1 %v2992_v0  ;;  %2382 = vmatprep.subr.bf16.mxu0 %v2992_v0 }
 0x7c3   :  { %2352 = vmatpush1.bf16.msra.mxu1 %v2994_v4  ;;  %2384 = vmatpush1.bf16.msra.mxu0 %v2994_v4 }
 0x7c4   :  { %2354 = vmatprep.subr.bf16.mxu1 %v2999_v12  ;;  %2386 = vmatprep.subr.bf16.mxu0 %v2999_v12 }
 0x7c7   :  { %2356 = vmatpush1.bf16.msra.mxu1 %v3002_v22  ;;  %2388 = vmatpush1.bf16.msra.mxu0 %v3002_v22 }
 0x7c8   :  { %2358 = vmatprep.subr.bf16.mxu1 %v3004_v23  ;;  %2390 = vmatprep.subr.bf16.mxu0 %v3004_v23 }
 0x7cb   :  { %2360 = vmatpush1.bf16.msra.mxu1 %v3009_v33  ;;  %2392 = vmatpush1.bf16.msra.mxu0 %v3009_v33 }
 0x7cc   :  { %1191 = vmatprep.subr.bf16.mxu1 %v2666_v3  ;;  %1396 = vmatprep.subr.bf16.mxu0 %v2666_v3 }
 0x83b   :  { %v1030_v41 = vpop.xlane.xlu0 %1029 }
 0x880   :  { %v1020_v34 = vpop.f32.mrb[12].mxu0 }
 0x881   :  { %v1031_v36 = vmul.f32 2.0, %v1020_v34  ;;  %v1022_v39 = vpop.f32.mrb[13].mxu0 }
 0x882   :  { %v1023_v42 = vpop.f32.mrb[14].mxu0 }
 0x883   :  { %v1032_v46 = vsub.f32 %v1030_v41, %v1031_v36  ;;  %v1024_v47 = vpop.f32.mrb[15].mxu0 }
 0x885   :  { %v1033_v20 = vadd.f32 %v1032_v46, %v2765_v63 }
 0x887   :  { %v1034_v24 = vrot.slane %v1033_v20, 4 }
 0x889   :  { %v1035_v52 = vmin.f32 %v1033_v20, %v1034_v24 }
 0x88b   :  { %v1036_v54 = vrot.slane %v1035_v52, 2 }
 0x88d   :  { %v1037_v58 = vmin.f32 %v1035_v52, %v1036_v54 }
 0x88f   :  { %v1038_v59 = vrot.slane %v1037_v58, 1 }
 0x891   :  { %v1039_v61 = vmin.f32 %v1037_v58, %v1038_v59 }
 0x893   :  { %vm1040_vm15 = vcmp.le.f32.partialorder %v1033_v20, %v1039_v61 }
 0x894   :  { %v1041_v62 = vsel %vm1040_vm15, %v2762_v57, 8 }
 0x895   :  { %v1042_v1 = vrot.slane %v1041_v62, 4 }
 0x897   :  { %vm1043_vm0 = vcmp.lt.s32.totalorder %v1041_v62, %v1042_v1 }
 0x898   :  { %v1044_v2 = vsel %vm1043_vm0, %v1041_v62, %v1042_v1 }
 0x899   :  { %v1045_v9 = vrot.slane %v1044_v2, 2 }
 0x89b   :  { %vm1046_vm1 = vcmp.lt.s32.totalorder %v1044_v2, %v1045_v9 }
 0x89c   :  { %v1047_v10 = vsel %vm1046_vm1, %v1044_v2, %v1045_v9 }
 0x89d   :  { %v1048_v11 = vrot.slane %v1047_v10, 1 }
 0x89f   :  { %vm1049_vm2 = vcmp.lt.s32.totalorder %v1047_v10, %v1048_v11 }
 0x8a0   :  { %v1050_v15 = vsel %vm1049_vm2, %v1047_v10, %v1048_v11 }
 0x8a1   :  { %vm1051_vm3 = vcmp.eq.s32.totalorder %v1050_v15, %v2762_v57 }
 0x8a2   :  { %vm1052_vm5 = vmand %vm1051_vm3, %vm113_vm4 }
 0x8a3   :  { %2190 = vmatmul.mubr.msk.f32.vlgmr.msra.gmra.mrb[12].mxu1 %vm1052_vm5, %v2625_v27  ;;  %v2189_v16 = vsel %vm1052_vm5, 1.0, %v2623_v55 }
 0x8a4   :  { %1126 = vadd.xlane.f32.xlu1 %v2189_v16  ;;  %1192 = vmatpush1.bf16.xpose.msra.mxu1 %v2668_v7 }
 0x8a5   :  { %1193 = vmatprep.subr.bf16.mxu1 %v2670_v8 }
 0x8ac   :  { %1194 = vmatpush1.bf16.xpose.msra.mxu1 %v2678_v13 }
 0x8ad   :  { %1195 = vmatprep.subr.bf16.mxu1 %v2680_v14 }
 0x8b4   :  { %1196 = vmatpush1.bf16.xpose.msra.mxu1 %v2684_v19 }
 0x8b5   :  { %1197 = vmatprep.subr.bf16.mxu1 %v2695_v26 }
 0x8bc   :  { %1198 = vmatpush1.bf16.xpose.msra.mxu1 %v2701_v30 }
 0x8bd   :  { %1199 = vmatprep.subr.bf16.mxu1 %v2704_v32 }
 0x8c4   :  { %1200 = vmatpush1.bf16.xpose.msra.mxu1 %v2708_v37 }
 0x8c5   :  { %1201 = vmatprep.subr.bf16.mxu1 %v2710_v38 }
 0x8cc   :  { %1202 = vmatpush1.bf16.xpose.msra.mxu1 %v2716_v43 }
 0x8cd   :  { %1203 = vmatprep.subr.bf16.mxu1 %v2718_v44 }
 0x8d4   :  { %1204 = vmatpush1.bf16.xpose.msra.mxu1 %v2722_v49 }
 0x8d5   :  { %1205 = vmatprep.subr.bf16.mxu1 %v2724_v50 }
 0x8dc   :  { %1206 = vmatpush1.bf16.xpose.msra.mxu1 %v2730_v53 }
 0x8dd   :  { %2394 = vmatprep.subr.bf16.mxu1 %v2952_v18 }
 0x931   :  { %v1127_v17 = vpop.xlane.xlu1 %1126 }
 0x932   :  { %v1128_v28 = vmax.f32 %v1127_v17, 1.0  ;;  %vm1130_vm6 = vcmp.gt.f32.partialorder %v1127_v17, 0.0 }
 0x934   :  { %2537 = vrcp.f32 %v1128_v28 }
 0x93e   :  { %v2538_v29 = vpop.eup %2537 }
 0x976   :  { %v1121_v34 = vpop.f32.mrb[12].mxu1 }
 0x977   :  { %v1131_v36 = vmul.f32 %v2538_v29, %v1121_v34  ;;  %v1123_v39 = vpop.f32.mrb[13].mxu1 }
 0x978   :  { %v1132_v41 = vmul.f32 %v2538_v29, %v1123_v39 }
 0x979   :  { %v3042_v42 = vsel %vm1130_vm6, %v1131_v36, %v2938_v5 }
 0x97a   :  { %v3045_v46 = vsel %vm1130_vm6, %v1132_v41, %v2941_v6  ;;  %v1231_v47 = vmul.f32 %v3042_v42, %v3042_v42  ;;  %v1189_v52 = vpack.c.bf16 %v3042_v42, %v3042_v42 }
 0x97b   :  { %v1190_v20 = vpack.c.bf16 %v3045_v46, %v3045_v46  ;;  %v1232_v24 = vmul.f32 %v3045_v46, %v3045_v46 }
 0x97d   :  { %1223 = vmatprep.mubr.bf16.mxu1 %v1190_v20  ;;  %v1233_v54 = vadd.f32 %v1232_v24, %v1231_v47 }
 0x97e   :  { %1224 = vmatmul.mubr.bf16.vlgmr.msra.gmra.mrb[16].mxu1 %v1189_v52 }
 0x97f   :  { %1234 = vadd.xlane.f32.xlu0 %v1233_v54  ;;  %2396 = vmatpush1.bf16.msra.mxu1 %v2954_v25 }
 0x980   :  { %2398 = vmatprep.subr.bf16.mxu1 %v2960_v31  ;;  %1529 = vmatprep.mubr.f32.mxu1 %v2623_v55 }
 0x983   :  { %2400 = vmatpush1.bf16.msra.mxu1 %v2962_v35 }
 0x984   :  { %2402 = vmatprep.subr.bf16.mxu1 %v2968_v40 }
 0x987   :  { %2404 = vmatpush1.bf16.msra.mxu1 %v2970_v45 }
 0x988   :  { %2406 = vmatprep.subr.bf16.mxu1 %v2976_v48 }
 0x98b   :  { %2408 = vmatpush1.bf16.msra.mxu1 %v2978_v51 }
 0x98c   :  { %2410 = vmatprep.subr.bf16.mxu1 %v2984_v56 }
 0x98f   :  { %2412 = vmatpush1.bf16.msra.mxu1 %v2986_v60 }
 0x990   :  { %2414 = vmatprep.subr.bf16.mxu1 %v2992_v0 }
 0x993   :  { %2416 = vmatpush1.bf16.msra.mxu1 %v2994_v4 }
 0x994   :  { %2418 = vmatprep.subr.bf16.mxu1 %v2999_v12 }
 0x997   :  { %2420 = vmatpush1.bf16.msra.mxu1 %v3002_v22 }
 0x998   :  { %2422 = vmatprep.subr.bf16.mxu1 %v3004_v23 }
 0x99b   :  { %2424 = vmatpush1.bf16.msra.mxu1 %v3009_v33 }
 0x99c   :  { %1601 = vmatprep.subr.bf16.mxu1 %v2666_v3 }
 0xa0c   :  { %v1235_v59 = vpop.xlane.xlu0 %1234 }
 0xa51   :  { %v1225_v5 = vpop.f32.mrb[16].mxu1 }
 0xa52   :  { %v1236_v6 = vmul.f32 2.0, %v1225_v5  ;;  %v1227_v58 = vpop.f32.mrb[17].mxu1 }
 0xa53   :  { %v1228_v61 = vpop.f32.mrb[18].mxu1 }
 0xa54   :  { %v1237_v62 = vsub.f32 %v1235_v59, %v1236_v6  ;;  %v1229_v1 = vpop.f32.mrb[19].mxu1 }
 0xa56   :  { %v1238_v2 = vadd.f32 %v1237_v62, %v2765_v63 }
 0xa58   :  { %v1239_v9 = vrot.slane %v1238_v2, 4 }
 0xa5a   :  { %v1240_v10 = vmin.f32 %v1238_v2, %v1239_v9 }
 0xa5c   :  { %v1241_v11 = vrot.slane %v1240_v10, 2 }
 0xa5e   :  { %v1242_v15 = vmin.f32 %v1240_v10, %v1241_v11 }
 0xa60   :  { %v1243_v16 = vrot.slane %v1242_v15, 1 }
 0xa62   :  { %v1244_v17 = vmin.f32 %v1242_v15, %v1243_v16 }
 0xa64   :  { %vm1245_vm7 = vcmp.le.f32.partialorder %v1238_v2, %v1244_v17 }
 0xa65   :  { %v1246_v28 = vsel %vm1245_vm7, %v2762_v57, 8 }
 0xa66   :  { %v1247_v29 = vrot.slane %v1246_v28, 4 }
 0xa68   :  { %vm1248_vm8 = vcmp.lt.s32.totalorder %v1246_v28, %v1247_v29 }
 0xa69   :  { %v1249_v34 = vsel %vm1248_vm8, %v1246_v28, %v1247_v29 }
 0xa6a   :  { %v1250_v36 = vrot.slane %v1249_v34, 2 }
 0xa6c   :  { %vm1251_vm9 = vcmp.lt.s32.totalorder %v1249_v34, %v1250_v36 }
 0xa6d   :  { %v1252_v39 = vsel %vm1251_vm9, %v1249_v34, %v1250_v36 }
 0xa6e   :  { %v1253_v41 = vrot.slane %v1252_v39, 1 }
 0xa70   :  { %vm1254_vm10 = vcmp.lt.s32.totalorder %v1252_v39, %v1253_v41 }
 0xa71   :  { %v1255_v47 = vsel %vm1254_vm10, %v1252_v39, %v1253_v41 }
 0xa72   :  { %vm1256_vm11 = vcmp.eq.s32.totalorder %v1255_v47, %v2762_v57 }
 0xa73   :  { %vm1257_vm12 = vmand %vm1256_vm11, %vm113_vm4 }
 0xa74   :  { %2192 = vmatmul.mubr.msk.f32.vlgmr.msra.gmra.mrb[16].mxu0 %vm1257_vm12, %v2625_v27  ;;  %v2191_v20 = vsel %vm1257_vm12, 1.0, %v2623_v55 }
 0xa75   :  { %1331 = vadd.xlane.f32.xlu1 %v2191_v20  ;;  %1397 = vmatpush1.bf16.xpose.msra.mxu0 %v2668_v7 }
 0xa76   :  { %1398 = vmatprep.subr.bf16.mxu0 %v2670_v8 }
 0xa7d   :  { %1399 = vmatpush1.bf16.xpose.msra.mxu0 %v2678_v13 }
 0xa7e   :  { %1400 = vmatprep.subr.bf16.mxu0 %v2680_v14 }
 0xa85   :  { %1401 = vmatpush1.bf16.xpose.msra.mxu0 %v2684_v19 }
 0xa86   :  { %1402 = vmatprep.subr.bf16.mxu0 %v2695_v26 }
 0xa8d   :  { %1403 = vmatpush1.bf16.xpose.msra.mxu0 %v2701_v30 }
 0xa8e   :  { %1404 = vmatprep.subr.bf16.mxu0 %v2704_v32 }
 0xa95   :  { %1405 = vmatpush1.bf16.xpose.msra.mxu0 %v2708_v37 }
 0xa96   :  { %1406 = vmatprep.subr.bf16.mxu0 %v2710_v38 }
 0xa9d   :  { %1407 = vmatpush1.bf16.xpose.msra.mxu0 %v2716_v43 }
 0xa9e   :  { %1408 = vmatprep.subr.bf16.mxu0 %v2718_v44 }
 0xaa5   :  { %1409 = vmatpush1.bf16.xpose.msra.mxu0 %v2722_v49 }
 0xaa6   :  { %1410 = vmatprep.subr.bf16.mxu0 %v2724_v50 }
 0xaad   :  { %1411 = vmatpush1.bf16.xpose.msra.mxu0 %v2730_v53 }
 0xaae   :  { %2426 = vmatprep.subr.bf16.mxu0 %v2952_v18 }
 0xb02   :  { %v1332_v24 = vpop.xlane.xlu1 %1331 }
 0xb03   :  { %v1333_v52 = vmax.f32 %v1332_v24, 1.0  ;;  %vm1335_vm13 = vcmp.gt.f32.partialorder %v1332_v24, 0.0 }
 0xb05   :  { %2539 = vrcp.f32 %v1333_v52 }
 0xb0f   :  { %v2540_v54 = vpop.eup %2539 }
 0xb47   :  { %v1326_v5 = vpop.f32.mrb[16].mxu0 }
 0xb48   :  { %v1336_v6 = vmul.f32 %v2540_v54, %v1326_v5  ;;  %v1328_v58 = vpop.f32.mrb[17].mxu0 }
 0xb49   :  { %v1337_v59 = vmul.f32 %v2540_v54, %v1328_v58 }
 0xb4a   :  { %v3096_v61 = vsel %vm1335_vm13, %v1336_v6, %v3042_v42 }
 0xb4b   :  { %v3099_v62 = vsel %vm1335_vm13, %v1337_v59, %v3045_v46  ;;  %v1436_v1 = vmul.f32 %v3096_v61, %v3096_v61  ;;  %v1394_v9 = vpack.c.bf16 %v3096_v61, %v3096_v61 }
 0xb4c   :  { %v1395_v18 = vpack.c.bf16 %v3099_v62, %v3099_v62  ;;  %v1437_v2 = vmul.f32 %v3099_v62, %v3099_v62 }
 0xb4e   :  { %1428 = vmatprep.mubr.bf16.mxu0 %v1395_v18  ;;  %v1438_v10 = vadd.f32 %v1437_v2, %v1436_v1 }
 0xb4f   :  { %1429 = vmatmul.mubr.bf16.vlgmr.msra.gmra.mrb[20].mxu0 %v1394_v9 }
 0xb50   :  { %1439 = vadd.xlane.f32.xlu0 %v1438_v10  ;;  %2428 = vmatpush1.bf16.msra.mxu0 %v2954_v25 }
 0xb51   :  { %2430 = vmatprep.subr.bf16.mxu0 %v2960_v31  ;;  %1734 = vmatprep.mubr.f32.mxu0 %v2623_v55 }
 0xb54   :  { %2432 = vmatpush1.bf16.msra.mxu0 %v2962_v35 }
 0xb55   :  { %2434 = vmatprep.subr.bf16.mxu0 %v2968_v40 }
 0xb58   :  { %2436 = vmatpush1.bf16.msra.mxu0 %v2970_v45 }
 0xb59   :  { %2438 = vmatprep.subr.bf16.mxu0 %v2976_v48 }
 0xb5c   :  { %2440 = vmatpush1.bf16.msra.mxu0 %v2978_v51 }
 0xb5d   :  { %2442 = vmatprep.subr.bf16.mxu0 %v2984_v56 }
 0xb60   :  { %2444 = vmatpush1.bf16.msra.mxu0 %v2986_v60 }
 0xb61   :  { %2446 = vmatprep.subr.bf16.mxu0 %v2992_v0 }
 0xb64   :  { %2448 = vmatpush1.bf16.msra.mxu0 %v2994_v4 }
 0xb65   :  { %2450 = vmatprep.subr.bf16.mxu0 %v2999_v12 }
 0xb68   :  { %2452 = vmatpush1.bf16.msra.mxu0 %v3002_v22 }
 0xb69   :  { %2454 = vmatprep.subr.bf16.mxu0 %v3004_v23 }
 0xb6c   :  { %2456 = vmatpush1.bf16.msra.mxu0 %v3009_v33 }
 0xb6d   :  { %1806 = vmatprep.subr.bf16.mxu0 %v2666_v3 }
 0xbdd   :  { %v1440_v40 = vpop.xlane.xlu0 %1439 }
 0xc22   :  { %v1430_v25 = vpop.f32.mrb[20].mxu0 }
 0xc23   :  { %v1441_v31 = vmul.f32 2.0, %v1430_v25  ;;  %v1432_v35 = vpop.f32.mrb[21].mxu0 }
 0xc24   :  { %v1433_v45 = vpop.f32.mrb[22].mxu0 }
 0xc25   :  { %v1442_v48 = vsub.f32 %v1440_v40, %v1441_v31  ;;  %v1434_v51 = vpop.f32.mrb[23].mxu0 }
 0xc27   :  { %v1443_v56 = vadd.f32 %v1442_v48, %v2765_v63 }
 0xc29   :  { %v1444_v60 = vrot.slane %v1443_v56, 4 }
 0xc2b   :  { %v1445_v0 = vmin.f32 %v1443_v56, %v1444_v60 }
 0xc2d   :  { %v1446_v4 = vrot.slane %v1445_v0, 2 }
 0xc2f   :  { %v1447_v12 = vmin.f32 %v1445_v0, %v1446_v4 }
 0xc31   :  { %v1448_v22 = vrot.slane %v1447_v12, 1 }
 0xc33   :  { %v1449_v42 = vmin.f32 %v1447_v12, %v1448_v22 }
 0xc35   :  { %vm1450_vm14 = vcmp.le.f32.partialorder %v1443_v56, %v1449_v42 }
 0xc36   :  { %v1451_v23 = vsel %vm1450_vm14, %v2762_v57, 8 }
 0xc37   :  { %v1452_v33 = vrot.slane %v1451_v23, 4 }
 0xc39   :  { %vm1453_vm15 = vcmp.lt.s32.totalorder %v1451_v23, %v1452_v33 }
 0xc3a   :  { %v1454_v46 = vsel %vm1453_vm15, %v1451_v23, %v1452_v33 }
 0xc3b   :  { %v1455_v11 = vrot.slane %v1454_v46, 2 }
 0xc3d   :  { %vm1456_vm0 = vcmp.lt.s32.totalorder %v1454_v46, %v1455_v11 }
 0xc3e   :  { %v1457_v15 = vsel %vm1456_vm0, %v1454_v46, %v1455_v11 }
 0xc3f   :  { %v1458_v16 = vrot.slane %v1457_v15, 1 }
 0xc41   :  { %vm1459_vm1 = vcmp.lt.s32.totalorder %v1457_v15, %v1458_v16 }
 0xc42   :  { %v1460_v17 = vsel %vm1459_vm1, %v1457_v15, %v1458_v16 }
 0xc43   :  { %vm1461_vm2 = vcmp.eq.s32.totalorder %v1460_v17, %v2762_v57 }
 0xc44   :  { %vm1462_vm3 = vmand %vm1461_vm2, %vm113_vm4 }
 0xc45   :  { %2194 = vmatmul.mubr.msk.f32.vlgmr.msra.gmra.mrb[14].mxu1 %vm1462_vm3, %v2625_v27  ;;  %v2193_v28 = vsel %vm1462_vm3, 1.0, %v2623_v55 }
 0xc46   :  { %1536 = vadd.xlane.f32.xlu1 %v2193_v28  ;;  %1602 = vmatpush1.bf16.xpose.msra.mxu1 %v2668_v7 }
 0xc47   :  { %1603 = vmatprep.subr.bf16.mxu1 %v2670_v8 }
 0xc4e   :  { %1604 = vmatpush1.bf16.xpose.msra.mxu1 %v2678_v13 }
 0xc4f   :  { %1605 = vmatprep.subr.bf16.mxu1 %v2680_v14 }
 0xc56   :  { %1606 = vmatpush1.bf16.xpose.msra.mxu1 %v2684_v19 }
 0xc57   :  { %1607 = vmatprep.subr.bf16.mxu1 %v2695_v26 }
 0xc5e   :  { %1608 = vmatpush1.bf16.xpose.msra.mxu1 %v2701_v30 }
 0xc5f   :  { %1609 = vmatprep.subr.bf16.mxu1 %v2704_v32 }
 0xc66   :  { %1610 = vmatpush1.bf16.xpose.msra.mxu1 %v2708_v37 }
 0xc67   :  { %1611 = vmatprep.subr.bf16.mxu1 %v2710_v38 }
 0xc6e   :  { %1612 = vmatpush1.bf16.xpose.msra.mxu1 %v2716_v43 }
 0xc6f   :  { %1613 = vmatprep.subr.bf16.mxu1 %v2718_v44 }
 0xc76   :  { %1614 = vmatpush1.bf16.xpose.msra.mxu1 %v2722_v49 }
 0xc77   :  { %1615 = vmatprep.subr.bf16.mxu1 %v2724_v50 }
 0xc7e   :  { %1616 = vmatpush1.bf16.xpose.msra.mxu1 %v2730_v53 }
 0xcd3   :  { %v1537_v29 = vpop.xlane.xlu1 %1536 }
 0xcd4   :  { %v1538_v34 = vmax.f32 %v1537_v29, 1.0  ;;  %vm1540_vm5 = vcmp.gt.f32.partialorder %v1537_v29, 0.0 }
 0xcd6   :  { %2541 = vrcp.f32 %v1538_v34 }
 0xce0   :  { %v2542_v36 = vpop.eup %2541 }
 0xd18   :  { %v1531_v39 = vpop.f32.mrb[14].mxu1 }
 0xd19   :  { %v1541_v41 = vmul.f32 %v2542_v36, %v1531_v39  ;;  %v1533_v47 = vpop.f32.mrb[15].mxu1 }
 0xd1a   :  { %v1542_v20 = vmul.f32 %v2542_v36, %v1533_v47 }
 0xd1b   :  { %v3149_v24 = vsel %vm1540_vm5, %v1541_v41, %v3096_v61 }
 0xd1c   :  { %v3152_v52 = vsel %vm1540_vm5, %v1542_v20, %v3099_v62  ;;  %v1641_v54 = vmul.f32 %v3149_v24, %v3149_v24  ;;  %v1599_v58 = vpack.c.bf16 %v3149_v24, %v3149_v24 }
 0xd1d   :  { %v1600_v5 = vpack.c.bf16 %v3152_v52, %v3152_v52  ;;  %v1642_v6 = vmul.f32 %v3152_v52, %v3152_v52 }
 0xd1f   :  { %1633 = vmatprep.mubr.bf16.mxu1 %v1600_v5  ;;  %v1643_v59 = vadd.f32 %v1642_v6, %v1641_v54  ;;  %v1754_v5 = vld [vmem:[#allocation4] sm:$0xff]  ;;  %v1756_v6 = vld [vmem:[#allocation4 + $0x10] sm:$0xff] }
 0xd20   :  { %1634 = vmatmul.mubr.bf16.vlgmr.msra.gmra.mrb[20].mxu1 %v1599_v58  ;;  %v2459_v58 = vpack.c.bf16 %v1756_v6, %v1754_v5  ;;  %v1782_v6 = vld [vmem:[#allocation4 + $0xe0] sm:$0xff] }
 0xd21   :  { %1644 = vadd.xlane.f32.xlu0 %v1643_v59  ;;  %1939 = vmatprep.mubr.f32.mxu1 %v2623_v55  ;;  %v1759_v59 = vld [vmem:[#allocation4 + $0x28] sm:$0xff] }
 0xdae   :  { %v1645_v18 = vpop.xlane.xlu0 %1644 }
 0xdf3   :  { %v1635_v61 = vpop.f32.mrb[20].mxu1 }
 0xdf4   :  { %v1646_v62 = vmul.f32 2.0, %v1635_v61  ;;  %v1637_v1 = vpop.f32.mrb[21].mxu1  ;;  %v1761_v61 = vld [vmem:[#allocation4 + $0x38] sm:$0xff] }
 0xdf5   :  { %v1638_v2 = vpop.f32.mrb[22].mxu1  ;;  %v1758_v1 = vld [vmem:[#allocation4 + $0x20] sm:$0xff] }
 0xdf6   :  { %v1647_v9 = vsub.f32 %v1645_v18, %v1646_v62  ;;  %v1639_v10 = vpop.f32.mrb[23].mxu1  ;;  %v2461_v62 = vpack.c.bf16 %v1761_v61, %v1759_v59  ;;  %v1760_v18 = vld [vmem:[#allocation4 + $0x30] sm:$0xff] }
 0xdf7   :  { %v2463_v2 = vpack.c.bf16 %v1760_v18, %v1758_v1  ;;  %v1765_v10 = vld [vmem:[#allocation4 + $0x58] sm:$0xff] }
 0xdf8   :  { %v1648_v25 = vadd.f32 %v1647_v9, %v2765_v63  ;;  %v1763_v9 = vld [vmem:[#allocation4 + $0x48] sm:$0xff] }
 0xdfa   :  { %v1649_v31 = vrot.slane %v1648_v25, 4 }
 0xdfc   :  { %v1650_v35 = vmin.f32 %v1648_v25, %v1649_v31  ;;  %v1762_v31 = vld [vmem:[#allocation4 + $0x40] sm:$0xff] }
 0xdfe   :  { %v1651_v40 = vrot.slane %v1650_v35, 2 }
 0xe00   :  { %v1652_v45 = vmin.f32 %v1650_v35, %v1651_v40  ;;  %v1764_v35 = vld [vmem:[#allocation4 + $0x50] sm:$0xff] }
 0xe01   :  { %v2467_v40 = vpack.c.bf16 %v1764_v35, %v1762_v31 }
 0xe02   :  { %v1653_v48 = vrot.slane %v1652_v45, 1 }
 0xe04   :  { %v1654_v51 = vmin.f32 %v1652_v45, %v1653_v48  ;;  %v1767_v45 = vld [vmem:[#allocation4 + $0x68] sm:$0xff]  ;;  %v1769_v48 = vld [vmem:[#allocation4 + $0x78] sm:$0xff] }
 0xe06   :  { %vm1655_vm6 = vcmp.le.f32.partialorder %v1648_v25, %v1654_v51  ;;  %v2465_v25 = vpack.c.bf16 %v1765_v10, %v1763_v9  ;;  %v2469_v51 = vpack.c.bf16 %v1769_v48, %v1767_v45 }
 0xe07   :  { %v1656_v56 = vsel %vm1655_vm6, %v2762_v57, 8 }
 0xe08   :  { %v1657_v60 = vrot.slane %v1656_v56, 4 }
 0xe0a   :  { %vm1658_vm7 = vcmp.lt.s32.totalorder %v1656_v56, %v1657_v60 }
 0xe0b   :  { %v1659_v0 = vsel %vm1658_vm7, %v1656_v56, %v1657_v60  ;;  %v1766_v56 = vld [vmem:[#allocation4 + $0x60] sm:$0xff]  ;;  %v1768_v60 = vld [vmem:[#allocation4 + $0x70] sm:$0xff] }
 0xe0c   :  { %v1660_v4 = vrot.slane %v1659_v0, 2 }
 0xe0e   :  { %vm1661_vm8 = vcmp.lt.s32.totalorder %v1659_v0, %v1660_v4 }
 0xe0f   :  { %v1662_v12 = vsel %vm1661_vm8, %v1659_v0, %v1660_v4  ;;  %v2471_v0 = vpack.c.bf16 %v1768_v60, %v1766_v56  ;;  %v1771_v4 = vld [vmem:[#allocation4 + $0x88] sm:$0xff] }
 0xe10   :  { %v1663_v22 = vrot.slane %v1662_v12, 1 }
 0xe12   :  { %vm1664_vm9 = vcmp.lt.s32.totalorder %v1662_v12, %v1663_v22 }
 0xe13   :  { %v1665_v42 = vsel %vm1664_vm9, %v1662_v12, %v1663_v22  ;;  %v1773_v12 = vld [vmem:[#allocation4 + $0x98] sm:$0xff] }
 0xe14   :  { %vm1666_vm10 = vcmp.eq.s32.totalorder %v1665_v42, %v2762_v57  ;;  %v2473_v22 = vpack.c.bf16 %v1773_v12, %v1771_v4  ;;  %v1770_v42 = vld [vmem:[#allocation4 + $0x80] sm:$0xff] }
 0xe15   :  { %vm1667_vm11 = vmand %vm1666_vm10, %vm113_vm4 }
 0xe16   :  { %2196 = vmatmul.mubr.msk.f32.vlgmr.msra.gmra.mrb[18].mxu0 %vm1667_vm11, %v2625_v27  ;;  %v2195_v23 = vsel %vm1667_vm11, 1.0, %v2623_v55 }
 0xe17   :  { %1741 = vadd.xlane.f32.xlu1 %v2195_v23  ;;  %1807 = vmatpush1.bf16.xpose.msra.mxu0 %v2668_v7  ;;  %v1772_v23 = vld [vmem:[#allocation4 + $0x90] sm:$0xff] }
 0xe18   :  { %1808 = vmatprep.subr.bf16.mxu0 %v2670_v8 }
 0xe1f   :  { %1809 = vmatpush1.bf16.xpose.msra.mxu0 %v2678_v13 }
 0xe20   :  { %1810 = vmatprep.subr.bf16.mxu0 %v2680_v14 }
 0xe27   :  { %1811 = vmatpush1.bf16.xpose.msra.mxu0 %v2684_v19 }
 0xe28   :  { %1812 = vmatprep.subr.bf16.mxu0 %v2695_v26 }
 0xe2f   :  { %1813 = vmatpush1.bf16.xpose.msra.mxu0 %v2701_v30 }
 0xe30   :  { %1814 = vmatprep.subr.bf16.mxu0 %v2704_v32 }
 0xe37   :  { %1815 = vmatpush1.bf16.xpose.msra.mxu0 %v2708_v37 }
 0xe38   :  { %1816 = vmatprep.subr.bf16.mxu0 %v2710_v38 }
 0xe3f   :  { %1817 = vmatpush1.bf16.xpose.msra.mxu0 %v2716_v43 }
 0xe40   :  { %1818 = vmatprep.subr.bf16.mxu0 %v2718_v44 }
 0xe47   :  { %1819 = vmatpush1.bf16.xpose.msra.mxu0 %v2722_v49 }
 0xe48   :  { %1820 = vmatprep.subr.bf16.mxu0 %v2724_v50 }
 0xe4f   :  { %1821 = vmatpush1.bf16.xpose.msra.mxu0 %v2730_v53 }
 0xea4   :  { %v1742_v33 = vpop.xlane.xlu1 %1741 }
 0xea5   :  { %v1743_v46 = vmax.f32 %v1742_v33, 1.0  ;;  %vm1745_vm12 = vcmp.gt.f32.partialorder %v1742_v33, 0.0  ;;  %v2475_v33 = vpack.c.bf16 %v1772_v23, %v1770_v42 }
 0xea7   :  { %2543 = vrcp.f32 %v1743_v46  ;;  %v1775_v46 = vld [vmem:[#allocation4 + $0xa8] sm:$0xff] }
 0xeb1   :  { %v2544_v11 = vpop.eup %2543 }
 0xee9   :  { %v1736_v15 = vpop.f32.mrb[18].mxu0 }
 0xeea   :  { %v1746_v16 = vmul.f32 %v2544_v11, %v1736_v15  ;;  %v1738_v17 = vpop.f32.mrb[19].mxu0 }
 0xeeb   :  { %v1747_v28 = vmul.f32 %v2544_v11, %v1738_v17  ;;  %v1777_v11 = vld [vmem:[#allocation4 + $0xb8] sm:$0xff]  ;;  %v1776_v17 = vld [vmem:[#allocation4 + $0xb0] sm:$0xff] }
 0xeec   :  { %v3186_v29 = vsel %vm1745_vm12, %v1746_v16, %v3149_v24  ;;  %v1755_v24 = vld [vmem:[#allocation4 + $0x8] sm:$0xff]  ;;  %v2477_v15 = vpack.c.bf16 %v1777_v11, %v1775_v46  ;;  %v1774_v16 = vld [vmem:[#allocation4 + $0xa0] sm:$0xff] }
 0xeed   :  { %v3189_v34 = vsel %vm1745_vm12, %v1747_v28, %v3152_v52  ;;  %v1846_v36 = vmul.f32 %v3186_v29, %v3186_v29  ;;  %v1804_v47 = vpack.c.bf16 %v3186_v29, %v3186_v29  ;;  %v1757_v52 = vld [vmem:[#allocation4 + $0x18] sm:$0xff]  ;;  %v2479_v28 = vpack.c.bf16 %v1776_v17, %v1774_v16 }
 0xeee   :  { %v1805_v39 = vpack.c.bf16 %v3189_v34, %v3189_v34  ;;  %v1847_v41 = vmul.f32 %v3189_v34, %v3189_v34  ;;  %v2457_v54 = vpack.c.bf16 %v1757_v52, %v1755_v24  ;;  %v1783_v24 = vld [vmem:[#allocation4 + $0xe8] sm:$0xff]  ;;  %v1785_v52 = vld [vmem:[#allocation4 + $0xf8] sm:$0xff] }
 0xeef   :  { %v2485_v5 = vpack.c.bf16 %v1785_v52, %v1783_v24 }
 0xef0   :  { %1838 = vmatprep.mubr.bf16.mxu0 %v1805_v39  ;;  %v1848_v20 = vadd.f32 %v1847_v41, %v1846_v36  ;;  %2458 = vmatprep.subr.bf16.mxu1 %v2457_v54  ;;  %v1779_v36 = vld [vmem:[#allocation4 + $0xc8] sm:$0xff]  ;;  %v1781_v39 = vld [vmem:[#allocation4 + $0xd8] sm:$0xff]  ;;  %v1778_v41 = vld [vmem:[#allocation4 + $0xc0] sm:$0xff] }
 0xef1   :  { %1839 = vmatmul.mubr.bf16.vlgmr.msra.gmra.mrb[24].mxu0 %v1804_v47  ;;  %2490 = vmatprep.subr.bf16.mxu0 %v2457_v54  ;;  %v2481_v47 = vpack.c.bf16 %v1781_v39, %v1779_v36 }
 0xef2   :  { %1849 = vadd.xlane.f32.xlu0 %v1848_v20  ;;  %2144 = vmatprep.mubr.f32.mxu0 %v2623_v55  ;;  %v1780_v20 = vld [vmem:[#allocation4 + $0xd0] sm:$0xff] }
 0xef3   :  { %2460 = vmatpush1.bf16.msra.mxu1 %v2459_v58  ;;  %2492 = vmatpush1.bf16.msra.mxu0 %v2459_v58  ;;  %v2483_v54 = vpack.c.bf16 %v1780_v20, %v1778_v41  ;;  %v1784_v58 = vld [vmem:[#allocation4 + $0xf0] sm:$0xff] }
 0xef4   :  { %2462 = vmatprep.subr.bf16.mxu1 %v2461_v62  ;;  %2494 = vmatprep.subr.bf16.mxu0 %v2461_v62  ;;  %v2487_v59 = vpack.c.bf16 %v1784_v58, %v1782_v6 }
 0xef7   :  { %2464 = vmatpush1.bf16.msra.mxu1 %v2463_v2  ;;  %2496 = vmatpush1.bf16.msra.mxu0 %v2463_v2 }
 0xef8   :  { %2466 = vmatprep.subr.bf16.mxu1 %v2465_v25  ;;  %2498 = vmatprep.subr.bf16.mxu0 %v2465_v25 }
 0xefb   :  { %2468 = vmatpush1.bf16.msra.mxu1 %v2467_v40  ;;  %2500 = vmatpush1.bf16.msra.mxu0 %v2467_v40 }
 0xefc   :  { %2470 = vmatprep.subr.bf16.mxu1 %v2469_v51  ;;  %2502 = vmatprep.subr.bf16.mxu0 %v2469_v51 }
 0xeff   :  { %2472 = vmatpush1.bf16.msra.mxu1 %v2471_v0  ;;  %2504 = vmatpush1.bf16.msra.mxu0 %v2471_v0 }
 0xf00   :  { %2474 = vmatprep.subr.bf16.mxu1 %v2473_v22  ;;  %2506 = vmatprep.subr.bf16.mxu0 %v2473_v22 }
 0xf03   :  { %2476 = vmatpush1.bf16.msra.mxu1 %v2475_v33  ;;  %2508 = vmatpush1.bf16.msra.mxu0 %v2475_v33 }
 0xf04   :  { %2478 = vmatprep.subr.bf16.mxu1 %v2477_v15  ;;  %2510 = vmatprep.subr.bf16.mxu0 %v2477_v15 }
 0xf07   :  { %2480 = vmatpush1.bf16.msra.mxu1 %v2479_v28  ;;  %2512 = vmatpush1.bf16.msra.mxu0 %v2479_v28 }
 0xf08   :  { %2482 = vmatprep.subr.bf16.mxu1 %v2481_v47  ;;  %2514 = vmatprep.subr.bf16.mxu0 %v2481_v47 }
 0xf0b   :  { %2484 = vmatpush1.bf16.msra.mxu1 %v2483_v54  ;;  %2516 = vmatpush1.bf16.msra.mxu0 %v2483_v54 }
 0xf0c   :  { %2486 = vmatprep.subr.bf16.mxu1 %v2485_v5  ;;  %2518 = vmatprep.subr.bf16.mxu0 %v2485_v5 }
 0xf0f   :  { %2488 = vmatpush1.bf16.msra.mxu1 %v2487_v59  ;;  %2520 = vmatpush1.bf16.msra.mxu0 %v2487_v59 }
 0xf10   :  { %2011 = vmatprep.subr.bf16.mxu1 %v2666_v3 }
 0xf7f   :  { %v1850_v18 = vpop.xlane.xlu0 %1849 }
 0xfc4   :  { %v1840_v61 = vpop.f32.mrb[24].mxu0 }
 0xfc5   :  { %v1851_v62 = vmul.f32 2.0, %v1840_v61  ;;  %v1842_v1 = vpop.f32.mrb[25].mxu0 }
 0xfc6   :  { %v1843_v2 = vpop.f32.mrb[26].mxu0 }
 0xfc7   :  { %v1852_v9 = vsub.f32 %v1850_v18, %v1851_v62  ;;  %v1844_v10 = vpop.f32.mrb[27].mxu0 }
 0xfc9   :  { %v1853_v25 = vadd.f32 %v1852_v9, %v2765_v63 }
 0xfcb   :  { %v1854_v31 = vrot.slane %v1853_v25, 4 }
 0xfcd   :  { %v1855_v35 = vmin.f32 %v1853_v25, %v1854_v31 }
 0xfcf   :  { %v1856_v40 = vrot.slane %v1855_v35, 2 }
 0xfd1   :  { %v1857_v45 = vmin.f32 %v1855_v35, %v1856_v40 }
 0xfd3   :  { %v1858_v48 = vrot.slane %v1857_v45, 1 }
 0xfd5   :  { %v1859_v51 = vmin.f32 %v1857_v45, %v1858_v48 }
 0xfd7   :  { %vm1860_vm13 = vcmp.le.f32.partialorder %v1853_v25, %v1859_v51 }
 0xfd8   :  { %v1861_v56 = vsel %vm1860_vm13, %v2762_v57, 8 }
 0xfd9   :  { %v1862_v60 = vrot.slane %v1861_v56, 4 }
 0xfdb   :  { %vm1863_vm14 = vcmp.lt.s32.totalorder %v1861_v56, %v1862_v60 }
 0xfdc   :  { %v1864_v3 = vsel %vm1863_vm14, %v1861_v56, %v1862_v60 }
 0xfdd   :  { %v1865_v0 = vrot.slane %v1864_v3, 2 }
 0xfdf   :  { %vm1866_vm15 = vcmp.lt.s32.totalorder %v1864_v3, %v1865_v0 }
 0xfe0   :  { %v1867_v4 = vsel %vm1866_vm15, %v1864_v3, %v1865_v0 }
 0xfe1   :  { %v1868_v12 = vrot.slane %v1867_v4, 1 }
 0xfe3   :  { %vm1869_vm0 = vcmp.lt.s32.totalorder %v1867_v4, %v1868_v12 }
 0xfe4   :  { %v1870_v22 = vsel %vm1869_vm0, %v1867_v4, %v1868_v12 }
 0xfe5   :  { %vm1871_vm1 = vcmp.eq.s32.totalorder %v1870_v22, %v2762_v57 }
 0xfe6   :  { %vm1872_vm2 = vmand %vm1871_vm1, %vm113_vm4 }
 0xfe7   :  { %2198 = vmatmul.mubr.msk.f32.vlgmr.msra.gmra.mrb[24].mxu1 %vm1872_vm2, %v2625_v27  ;;  %v2197_v42 = vsel %vm1872_vm2, 1.0, %v2623_v55 }
 0xfe8   :  { %1946 = vadd.xlane.f32.xlu1 %v2197_v42  ;;  %2012 = vmatpush1.bf16.xpose.msra.mxu1 %v2668_v7 }
 0xfe9   :  { %2013 = vmatprep.subr.bf16.mxu1 %v2670_v8 }
 0xff0   :  { %2014 = vmatpush1.bf16.xpose.msra.mxu1 %v2678_v13 }
 0xff1   :  { %2015 = vmatprep.subr.bf16.mxu1 %v2680_v14 }
 0xff8   :  { %2016 = vmatpush1.bf16.xpose.msra.mxu1 %v2684_v19 }
 0xff9   :  { %2017 = vmatprep.subr.bf16.mxu1 %v2695_v26 }
0x1000   :  { %2018 = vmatpush1.bf16.xpose.msra.mxu1 %v2701_v30 }
0x1001   :  { %2019 = vmatprep.subr.bf16.mxu1 %v2704_v32 }
0x1008   :  { %2020 = vmatpush1.bf16.xpose.msra.mxu1 %v2708_v37 }
0x1009   :  { %2021 = vmatprep.subr.bf16.mxu1 %v2710_v38 }
0x1010   :  { %2022 = vmatpush1.bf16.xpose.msra.mxu1 %v2716_v43 }
0x1011   :  { %2023 = vmatprep.subr.bf16.mxu1 %v2718_v44 }
0x1018   :  { %2024 = vmatpush1.bf16.xpose.msra.mxu1 %v2722_v49 }
0x1019   :  { %2025 = vmatprep.subr.bf16.mxu1 %v2724_v50 }
0x1020   :  { %2026 = vmatpush1.bf16.xpose.msra.mxu1 %v2730_v53 }
0x1075   :  { %v1947_v7 = vpop.xlane.xlu1 %1946 }
0x1076   :  { %v1948_v8 = vmax.f32 %v1947_v7, 1.0  ;;  %vm1950_vm3 = vcmp.gt.f32.partialorder %v1947_v7, 0.0 }
0x1078   :  { %2545 = vrcp.f32 %v1948_v8 }
0x1082   :  { %v2546_v13 = vpop.eup %2545 }
0x10ba   :  { %v1941_v14 = vpop.f32.mrb[24].mxu1 }
0x10bb   :  { %v1951_v19 = vmul.f32 %v2546_v13, %v1941_v14  ;;  %v1943_v26 = vpop.f32.mrb[25].mxu1 }
0x10bc   :  { %v1952_v30 = vmul.f32 %v2546_v13, %v1943_v26 }
0x10bd   :  { %v1955_v32 = vsel %vm1950_vm3, %v1951_v19, %v3186_v29 }
0x10be   :  { %v1956_v37 = vsel %vm1950_vm3, %v1952_v30, %v3189_v34  ;;  %v2051_v38 = vmul.f32 %v1955_v32, %v1955_v32  ;;  %v2009_v49 = vpack.c.bf16 %v1955_v32, %v1955_v32 }
0x10bf   :  { %v2010_v43 = vpack.c.bf16 %v1956_v37, %v1956_v37  ;;  %v2052_v44 = vmul.f32 %v1956_v37, %v1956_v37 }
0x10c1   :  { %2043 = vmatprep.mubr.bf16.mxu1 %v2010_v43  ;;  %v2053_v50 = vadd.f32 %v2052_v44, %v2051_v38 }
0x10c2   :  { %2044 = vmatmul.mubr.bf16.vlgmr.msra.gmra.mrb[28].mxu1 %v2009_v49 }
0x10c3   :  { %2054 = vadd.xlane.f32.xlu0 %v2053_v50 }
0x1150   :  { %v2055_v33 = vpop.xlane.xlu0 %2054 }
0x1195   :  { %v2045_v53 = vpop.f32.mrb[28].mxu1 }
0x1196   :  { %v2056_v55 = vmul.f32 2.0, %v2045_v53  ;;  %v2047_v23 = vpop.f32.mrb[29].mxu1 }
0x1197   :  { %v2048_v46 = vpop.f32.mrb[30].mxu1 }
0x1198   :  { %v2057_v11 = vsub.f32 %v2055_v33, %v2056_v55  ;;  %v2049_v15 = vpop.f32.mrb[31].mxu1 }
0x119a   :  { %v2058_v16 = vadd.f32 %v2057_v11, %v2765_v63 }
0x119c   :  { %v2059_v29 = vrot.slane %v2058_v16, 4 }
0x119e   :  { %v2060_v17 = vmin.f32 %v2058_v16, %v2059_v29 }
0x11a0   :  { %v2061_v34 = vrot.slane %v2060_v17, 2 }
0x11a2   :  { %v2062_v28 = vmin.f32 %v2060_v17, %v2061_v34 }
0x11a4   :  { %v2063_v36 = vrot.slane %v2062_v28, 1 }
0x11a6   :  { %v2064_v39 = vmin.f32 %v2062_v28, %v2063_v36 }
0x11a8   :  { %vm2065_vm5 = vcmp.le.f32.partialorder %v2058_v16, %v2064_v39 }
0x11a9   :  { %v2066_v41 = vsel %vm2065_vm5, %v2762_v57, 8 }
0x11aa   :  { %v2067_v47 = vrot.slane %v2066_v41, 4 }
0x11ac   :  { %vm2068_vm6 = vcmp.lt.s32.totalorder %v2066_v41, %v2067_v47 }
0x11ad   :  { %v2069_v20 = vsel %vm2068_vm6, %v2066_v41, %v2067_v47 }
0x11ae   :  { %v2070_v24 = vrot.slane %v2069_v20, 2 }
0x11b0   :  { %vm2071_vm7 = vcmp.lt.s32.totalorder %v2069_v20, %v2070_v24 }
0x11b1   :  { %v2072_v52 = vsel %vm2071_vm7, %v2069_v20, %v2070_v24 }
0x11b2   :  { %v2073_v54 = vrot.slane %v2072_v52, 1 }
0x11b4   :  { %vm2074_vm8 = vcmp.lt.s32.totalorder %v2072_v52, %v2073_v54 }
0x11b5   :  { %v2075_v5 = vsel %vm2074_vm8, %v2072_v52, %v2073_v54 }
0x11b6   :  { %vm2076_vm9 = vcmp.eq.s32.totalorder %v2075_v5, %v2762_v57  ;;  %2164 = vst [vmem:[#allocation9] sm:$0x1] %v2075_v5 }
0x11b7   :  { %vm2077_vm10 = vmand %vm2076_vm9, %vm113_vm4 }
0x11b8   :  { %2200 = vmatmul.mubr.msk.f32.vlgmr.msra.gmra.mrb[28].mxu0 %vm2077_vm10, %v2625_v27 }
0x11b9   :  { %2602 = shalt.err (!%p2599_p6)
}
0x11ba   :  { %s2603_s11 = scalar_lea.hbm %s3245_s2, 16 }
0x11bb   :  { %p2604_p7 = scmp.ne.s32.totalorder %s3245_s2, %s2603_s11  ;;  %p2607_p8 = scmp.lt.u32.totalorder %s2603_s11, %s3245_s2 }
0x11bd   :  { %p2609_p9 = pnand %p2607_p8, %p2604_p7 }
0x11bf   :  { %2612 = shalt.err (!%p2609_p9)
}
0x11c0   :  { %2174 = dma.vmem_to_hbm [thread:$0]  %s2172_s6, 16, %s3245_s2, [#allocation6]  }
0x128b   :  { %v2146_v57 = vpop.f32.mrb[28].mxu0 }
0x128c   :  { %v2148_v63 = vpop.f32.mrb[29].mxu0 }
0x128d   :  { %2617 = dma.done.wait [#allocation6], 16  }
0x128e   :  { %2618 = vsyncadd [#allocation6], 4294967280 }
0x128f   :  { %2178 = vsyncpa [#allocation5], 1 }
0x1290   :  { %2179 = vsyncpa [#allocation8], 1 }
0x1291   :  { %2180 = vsyncpa [#allocation6], 1 }

</bundles_post_ra>
